<compile_context>
chip_gen: v6e
topology: v6e:2x2x1
jax: 0.10.0
libtpu: 0.0.40
codegen_flags: <defaults>
</compile_context>

<pallas_src>
import jax
import jax.numpy as jnp
from jax.experimental import pallas as pl
from jax.experimental.pallas import tpu as pltpu


# --------------------------------------------------------------------------
# Fused Pallas kernel (factory closes over static dims + slab offsets)
# --------------------------------------------------------------------------
def _make_fused_kernel(dims, offs):
    N, F, P, C, HID, R, OUT = dims
    f32 = jnp.float32
    bf16 = jnp.bfloat16

    def kernel(w_ref, d_ref, out_ref):
        # w_ref : (rows, 64) bf16 slab -- adjacency, features and ALL weights.
        # d_ref : (P*N, 4C) f32 slab   -- [H0 tiled twice | per-(period,branch) probs].
        def w(name):
            off, r, c = offs[name]
            return w_ref[off:off + r, 0:c]

        H0t2 = d_ref[:, 0:2 * C]            # (PN, 2C)  [H0 | H0], tiled over periods
        Wp = d_ref[:, 2 * C:4 * C]          # (PN, 2C)  attention probs per row/branch

        # ---- A3TGCN, both branches + all periods fused (3 MXU pushes) -------
        # lane order of `cl`: [z_p, z_s, r_p, r_s, h_p, h_s], each of width C.
        AX = jnp.dot(w("A"), w("X"), preferred_element_type=f32)            # (PN, 2F)
        lhs = jnp.concatenate([AX, H0t2[:, 0:C]], axis=1).astype(bf16)      # (PN, 2F+C)
        cl = jnp.dot(lhs, w("W1"), preferred_element_type=f32) \
            + w("b1").astype(f32)                                           # (PN, 6C)

        ZR = jax.nn.sigmoid(cl[:, 0:4 * C])                                 # 1 EUP push
        Z2 = ZR[:, 0:2 * C]
        R2 = ZR[:, 2 * C:4 * C]
        HR = (H0t2 * R2).astype(bf16)
        hh = jnp.dot(HR, w("W2"), preferred_element_type=f32)               # (PN, 2C)
        Ht = jnp.tanh(cl[:, 4 * C:6 * C] + hh)                              # 1 EUP push
        Hn = Z2 * H0t2 + (1.0 - Z2) * Ht                                    # (PN, 2C)

        # Attention-weighted reduction over periods (P-1 cheap VPU adds).
        ws = Hn * Wp
        acc = ws[0:N]
        for p in range(1, P):
            acc = acc + ws[p * N:(p + 1) * N]                               # (N, 2C)

        # ---- per-node Kronecker + reduce_dim --------------------------------
        acc_bf = acc.astype(bf16)
        spread = jnp.dot(acc_bf[:, 0:C], w("SPREAD"), preferred_element_type=f32)
        tiled = jnp.dot(acc_bf[:, C:2 * C], w("TILE"), preferred_element_type=f32)
        flat = (spread * tiled).astype(bf16)                                # (N, C*C)
        seq = jnp.dot(flat, w("redW"), preferred_element_type=f32) \
            + w("redb").astype(f32)                                         # (N, HID)

        # ---- LSTM ------------------------------------------------------------
        # i/f/o columns of Wih/Whh/bias were pre-scaled by 0.5 in the wrapper, so
        # one tanh + affine fix-up yields all four gate activations
        # (sigmoid(x) = 0.5*tanh(x/2) + 0.5): 2 EUP pushes / step instead of 5.
        xW = jnp.dot(seq.astype(bf16), w("Wih"), preferred_element_type=f32) \
            + w("blstm").astype(f32)                                        # (N, 4R)
        Whh = w("Whh")                                                      # (R, 4R)
        gmul = jnp.concatenate([jnp.full((1, R), 0.5, f32),
                                jnp.full((1, R), 0.5, f32),
                                jnp.full((1, R), 1.0, f32),
                                jnp.full((1, R), 0.5, f32)], axis=1)
        gadd = jnp.concatenate([jnp.full((1, R), 0.5, f32),
                                jnp.full((1, R), 0.5, f32),
                                jnp.full((1, R), 0.0, f32),
                                jnp.full((1, R), 0.5, f32)], axis=1)

        h = jnp.zeros((1, R), f32)
        c = jnp.zeros((1, R), f32)
        for t in range(N):  # static unroll; recurrence is inherently serial
            pre = xW[t:t + 1, :] + jnp.dot(h.astype(bf16), Whh,
                                           preferred_element_type=f32)
            gates = jnp.tanh(pre) * gmul + gadd                             # [i, f, g, o]
            i_g = gates[:, 0:R]
            f_g = gates[:, R:2 * R]
            g_g = gates[:, 2 * R:3 * R]
            o_g = gates[:, 3 * R:4 * R]
            c = f_g * c + i_g * g_g
            h = o_g * jnp.tanh(c)

        # ---- MLP head --------------------------------------------------------
        hid = jnp.maximum(
            jnp.dot(h.astype(bf16), w("fc1w"), preferred_element_type=f32)
            + w("fc1b").astype(f32), 0.0)
        out_ref[...] = (jnp.dot(hid.astype(bf16), w("fc2w"),
                                preferred_element_type=f32)
                        + w("fc2b").astype(f32))

    return kernel


# --------------------------------------------------------------------------
# Glue: adjacency, weight folding / packing, slabs, pallas_call wrapper
# --------------------------------------------------------------------------
def build_gcn_adjacency(edge_index, edge_attr, num_nodes):
    """Dense D^{-1/2}(A + I)D^{-1/2}, A[dst, src] = edge weight (GCNConv norm)."""
    src = edge_index[0]
    dst = edge_index[1]
    A = jnp.zeros((num_nodes, num_nodes), jnp.float32)
    A = A.at[dst, src].add(edge_attr.astype(jnp.float32))
    A = A + jnp.eye(num_nodes, dtype=jnp.float32)
    deg = A.sum(axis=1)
    dinv = jax.lax.rsqrt(deg)
    return A * dinv[:, None] * dinv[None, :]


def _round_up(x, m):
    return ((x + m - 1) // m) * m


def _pack_slab(named, width, dtype, align):
    """Row-concatenate 2-D tensors into one (rows, width) zero-padded slab."""
    parts, offs, off = [], {}, 0
    for name, t in named:
        r, c = t.shape
        rp = _round_up(r, align)
        buf = jnp.zeros((rp, width), dtype).at[:r, :c].set(t.astype(dtype))
        parts.append(buf)
        offs[name] = (off, r, c)
        off += rp
    return jnp.concatenate(parts, axis=0), offs


def temporal_gat_rnn_forward(params, x_price, x_sentiment, edge_index, edge_attr,
                             temporal_features):
    hi = jax.lax.Precision.HIGHEST
    N, F, P = x_price.shape
    H0 = temporal_features.astype(jnp.float32)                     # (N, C)
    C = H0.shape[1]
    PN = P * N
    HID = params["reduce_W"].shape[1]
    R = params["lstm_Whh"].shape[-1]
    OUT = params["fc2_W"].shape[1]

    # ---- activations --------------------------------------------------------
    A_hat = build_gcn_adjacency(edge_index, edge_attr, N)                    # (N, N)
    A_blk = jnp.kron(jnp.eye(P, dtype=jnp.float32), A_hat)                   # (PN, PN)

    def pack_x(x):  # (N, F, P) -> (PN, F); rows p*N:(p+1)*N = period p
        return jnp.transpose(x, (2, 0, 1)).reshape(PN, F).astype(jnp.float32)

    X_ls = jnp.concatenate([pack_x(x_price), pack_x(x_sentiment)], axis=1)   # (PN, 2F)

    # ---- A3TGCN weights: fold GCNConv weight/bias into the gate linear ------
    def branch(tp):
        convW, convB, linW, linB = tp["convW"], tp["convB"], tp["linW"], tp["linB"]
        compW = [jnp.dot(convW[g], linW[g, 0:C, :], precision=hi) for g in range(3)]
        compB = [jnp.dot(convB[g], linW[g, 0:C, :], precision=hi) + linB[g]
                 for g in range(3)]
        hW = [linW[g, C:2 * C, :] for g in range(3)]
        probs = jax.nn.softmax(tp["attention"]).astype(jnp.float32)
        return compW, compB, hW, probs

    cWp, cBp, hWp, probs_p = branch(params["tgat_price"])
    cWs, cBs, hWs, probs_s = branch(params["tgat_sentiment"])

    zF = jnp.zeros((F, C), jnp.float32)
    zC = jnp.zeros((C, C), jnp.float32)
    # cl lane order: [z_p, z_s, r_p, r_s, h_p, h_s]
    W1 = jnp.concatenate([
        jnp.concatenate([cWp[0], zF, cWp[1], zF, cWp[2], zF], axis=1),       # price feats
        jnp.concatenate([zF, cWs[0], zF, cWs[1], zF, cWs[2]], axis=1),       # sent feats
        jnp.concatenate([hWp[0], hWs[0], hWp[1], hWs[1], zC, zC], axis=1),   # H0 part
    ], axis=0)                                                               # (2F+C, 6C)
    b1 = jnp.concatenate([cBp[0], cBs[0], cBp[1], cBs[1], cBp[2], cBs[2]],
                         axis=1)                                             # (1, 6C)
    W2 = jnp.concatenate([
        jnp.concatenate([hWp[2], zC], axis=1),
        jnp.concatenate([zC, hWs[2]], axis=1)], axis=0)                      # (2C, 2C)

    # ---- Kronecker spread/tile 0-1 matrices ----------------------------------
    eyeC = jnp.eye(C, dtype=jnp.float32)
    SPREAD = jnp.kron(eyeC, jnp.ones((1, C), jnp.float32))                   # (C, C*C)
    TILE = jnp.kron(jnp.ones((1, C), jnp.float32), eyeC)                     # (C, C*C)

    # ---- LSTM weights: gate order [i,f,g,o]; i/f/o columns pre-scaled by 0.5 --
    Wih = jnp.concatenate([params["lstm_Wih"][k] for k in range(4)], axis=1)  # (HID,4R)
    Whh = jnp.concatenate([params["lstm_Whh"][k] for k in range(4)], axis=1)  # (R, 4R)
    bl = jnp.concatenate([params["lstm_b"][k] for k in range(4)], axis=1)     # (1, 4R)
    sc = jnp.concatenate([jnp.full((1, R), 0.5), jnp.full((1, R), 0.5),
                          jnp.full((1, R), 1.0), jnp.full((1, R), 0.5)],
                         axis=1).astype(jnp.float32)
    Wih, Whh, bl = Wih * sc, Whh * sc, bl * sc

    # ---- pack everything into 2 slabs (2 DMAs instead of 20) ------------------
    named = [
        ("A", A_blk), ("X", X_ls), ("W1", W1), ("b1", b1), ("W2", W2),
        ("SPREAD", SPREAD), ("TILE", TILE),
        ("redW", params["reduce_W"]), ("redb", params["reduce_b"]),
        ("Wih", Wih), ("Whh", Whh), ("blstm", bl),
        ("fc1w", params["fc1_W"]), ("fc1b", params["fc1_b"]),
        ("fc2w", params["fc2_W"]), ("fc2b", params["fc2_b"]),
    ]
    width = max(t.shape[1] for _, t in named)
    wslab, offs = _pack_slab(named, width, jnp.bfloat16, align=16)

    H0t2 = jnp.tile(jnp.concatenate([H0, H0], axis=1), (P, 1))               # (PN, 2C)
    Wp = jnp.concatenate([
        jnp.broadcast_to(jnp.repeat(probs_p, N)[:, None], (PN, C)),
        jnp.broadcast_to(jnp.repeat(probs_s, N)[:, None], (PN, C))], axis=1)  # (PN, 2C)
    dslab = jnp.concatenate([H0t2, Wp], axis=1).astype(jnp.float32)          # (PN, 4C)

    kernel = _make_fused_kernel((N, F, P, C, HID, R, OUT), offs)
    vmem = pl.BlockSpec(memory_space=pltpu.MemorySpace.VMEM)
    return pl.pallas_call(
        kernel,
        out_shape=jax.ShapeDtypeStruct((1, OUT), jnp.float32),
        in_specs=[vmem, vmem],
        out_specs=vmem,
    )(wslab, dslab)


# --------------------------------------------------------------------------
# Parameter init (same layout as before, so the reference stays unchanged)
# --------------------------------------------------------------------------
def init_params(key, F, C, P, hidden, R, out_dim):
    ks = list(jax.random.split(key, 16))

    def nrm(k, shape, scale=0.1):
        return (scale * jax.random.normal(k, shape)).astype(jnp.float32)

    def tgat(k):
        k1, k2, k3, k4, k5 = jax.random.split(k, 5)
        return dict(
            convW=nrm(k1, (3, F, C)),
            convB=nrm(k2, (3, 1, C)),
            linW=nrm(k3, (3, 2 * C, C)),
            linB=nrm(k4, (3, 1, C)),
            attention=nrm(k5, (P,), scale=1.0),
        )

    return dict(
        tgat_price=tgat(ks[0]),
        tgat_sentiment=tgat(ks[1]),
        reduce_W=nrm(ks[2], (C * C, hidden)),
        reduce_b=nrm(ks[3], (1, hidden)),
        lstm_Wih=nrm(ks[4], (4, hidden, R)),
        lstm_Whh=nrm(ks[5], (4, R, R)),
        lstm_b=nrm(ks[6], (4, 1, R)),
        fc1_W=nrm(ks[7], (R, hidden)),
        fc1_b=nrm(ks[8], (1, hidden)),
        fc2_W=nrm(ks[9], (hidden, out_dim)),
        fc2_b=nrm(ks[10], (1, out_dim)),
    )


# --------------------------------------------------------------------------
# Pure-JAX reference (same math, unpacked parameters, HIGHEST precision)
# --------------------------------------------------------------------------
def _ref_forward(params, x_price, x_sentiment, edge_index, edge_attr, temporal_features):
    hi = jax.lax.Precision.HIGHEST
    N = x_price.shape[0]
    A_hat = build_gcn_adjacency(edge_index, edge_attr, N)
    H0 = temporal_features.astype(jnp.float32)
    C = H0.shape[1]

    def a3tgcn(tp, x_nfp):
        probs = jax.nn.softmax(tp["attention"])
        acc = jnp.zeros_like(H0)
        for p in range(x_nfp.shape[2]):
            Xt = x_nfp[:, :, p].astype(jnp.float32)

            def gcn(g):
                return jnp.dot(A_hat, jnp.dot(Xt, tp["convW"][g], precision=hi),
                               precision=hi) + tp["convB"][g]

            def gate(g, conv_out, h_part):
                return (jnp.dot(conv_out, tp["linW"][g, :C], precision=hi)
                        + jnp.dot(h_part, tp["linW"][g, C:], precision=hi)
                        + tp["linB"][g])

            Z = jax.nn.sigmoid(gate(0, gcn(0), H0))
            R = jax.nn.sigmoid(gate(1, gcn(1), H0))
            Ht = jnp.tanh(gate(2, gcn(2), H0 * R))
            acc = acc + probs[p] * (Z * H0 + (1.0 - Z) * Ht)
        return acc

    price_out = a3tgcn(params["tgat_price"], x_price)
    sent_out = a3tgcn(params["tgat_sentiment"], x_sentiment)

    outer = price_out[:, :, None] * sent_out[:, None, :]                     # (N, C, C)
    flat = outer.reshape(outer.shape[0], -1)                                 # (N, C*C)
    combined = jnp.dot(flat, params["reduce_W"], precision=hi) + params["reduce_b"]

    R = params["lstm_Whh"].shape[-1]
    h = jnp.zeros((1, R), jnp.float32)
    c = jnp.zeros((1, R), jnp.float32)
    for t in range(combined.shape[0]):
        x = combined[t:t + 1]
        pre = [jnp.dot(x, params["lstm_Wih"][k], precision=hi)
               + jnp.dot(h, params["lstm_Whh"][k], precision=hi)
               + params["lstm_b"][k] for k in range(4)]
        i, f = jax.nn.sigmoid(pre[0]), jax.nn.sigmoid(pre[1])
        g, o = jnp.tanh(pre[2]), jax.nn.sigmoid(pre[3])
        c = f * c + i * g
        h = o * jnp.tanh(c)

    hid = jnp.maximum(jnp.dot(h, params["fc1_W"], precision=hi) + params["fc1_b"], 0.0)
    return jnp.dot(hid, params["fc2_W"], precision=hi) + params["fc2_b"]


# --------------------------------------------------------------------------
if __name__ == "__main__":
    # Small, deterministic shapes.
    N = 8           # num graph nodes (also the RNN sequence length)
    F = 4           # input_dim (node features per period)
    P = 5           # periods (fixed by the module: A3TGCN(periods=5))
    C = 8           # tgat_out_dim
    HIDDEN = 32     # hidden_dim
    RNN = 16        # rnn_hidden_dim
    OUT = 4         # output_dim

    key = jax.random.PRNGKey(0)
    k_par, k_xp, k_xs, k_ea, k_tf = jax.random.split(key, 5)

    params = init_params(k_par, F, C, P, HIDDEN, RNN, OUT)

    x_price = jax.random.normal(k_xp, (N, F, P), jnp.float32)
    x_sentiment = jax.random.normal(k_xs, (N, F, P), jnp.float32)

    # Bidirectional ring graph: E = 2N edges.
    idx = jnp.arange(N, dtype=jnp.int32)
    src = jnp.concatenate([idx, idx])
    dst = jnp.concatenate([(idx + 1) % N, (idx - 1) % N])
    edge_index = jnp.stack([src, dst]).astype(jnp.int32)            # (2, 2N)
    edge_attr = jax.random.uniform(k_ea, (2 * N,), jnp.float32, 0.5, 1.5)

    temporal_features = jax.random.normal(k_tf, (N, C), jnp.float32)  # initial H of TGCN

    fwd = jax.jit(temporal_gat_rnn_forward)
    out = fwd(params, x_price, x_sentiment, edge_index, edge_attr, temporal_features)
    out = jax.block_until_ready(out)

    ref = _ref_forward(params, x_price, x_sentiment, edge_index, edge_attr,
                       temporal_features)
    ref = jax.block_until_ready(ref)

    assert out.shape == (1, OUT), out.shape
    assert bool(jnp.all(jnp.isfinite(out)))
    # bf16 matmul operands with f32 accumulation; errors are ~1e-3, well within tol.
    assert bool(jnp.allclose(out, ref, atol=1e-2, rtol=1e-2)), (out, ref)

    print("KERNEL_OK")
</pallas_src>

<mosaic_0001>
module attributes {stable_mosaic.version = 11 : i64} {
  func.func private @main(%arg0: i32) attributes {dimension_semantics = [#tpu.dimension_semantics<core_parallel>], iteration_bounds = array<i64: 2>, tpu.core_type = #tpu.core_type<sc_scalar_subcore>, window_params = []} {
    return
  }
}

module attributes {stable_mosaic.version = 11 : i64} {
  func.func private @main(%arg0: i32) attributes {dimension_semantics = [#tpu.dimension_semantics<core_parallel>], iteration_bounds = array<i64: 2>, tpu.core_type = #tpu.core_type<sc_scalar_subcore>, window_params = []} {
    return
  }
}

module attributes {stable_mosaic.version = 11 : i64} {
  func.func @kernel(%arg0: memref<400x64xbf16, #tpu.memory_space<vmem>>, %arg1: memref<40x32xf32, #tpu.memory_space<vmem>>, %arg2: memref<1x4xf32, #tpu.memory_space<vmem>>) attributes {dimension_semantics = [], scalar_prefetch = 0 : i64, scratch_operands = 0 : i64, tpu.core_type = #tpu.core_type<tc>} {
    %c0 = arith.constant 0 : index
    %c0_0 = arith.constant 0 : index
    %0 = vector.load %arg1[%c0, %c0_0] : memref<40x32xf32, #tpu.memory_space<vmem>>, vector<40x16xf32>
    %c0_1 = arith.constant 0 : index
    %c16 = arith.constant 16 : index
    %1 = vector.load %arg1[%c0_1, %c16] : memref<40x32xf32, #tpu.memory_space<vmem>>, vector<40x16xf32>
    %c0_2 = arith.constant 0 : index
    %c0_3 = arith.constant 0 : index
    %2 = vector.load %arg0[%c0_2, %c0_3] : memref<400x64xbf16, #tpu.memory_space<vmem>>, vector<40x40xbf16>
    %c48 = arith.constant 48 : index
    %c0_4 = arith.constant 0 : index
    %3 = vector.load %arg0[%c48, %c0_4] : memref<400x64xbf16, #tpu.memory_space<vmem>>, vector<40x8xbf16>
    %cst = arith.constant dense<0.000000e+00> : vector<40x8xf32>
    %4 = tpu.matmul %2, %3, %cst {dimension_numbers = #tpu.dot_dimension_numbers<[1], [0], [0], [1], [0, 0, 1, 1], [], []>} : vector<40x40xbf16>, vector<40x8xbf16>, vector<40x8xf32> -> vector<40x8xf32>
    %5 = vector.extract_strided_slice %0 {offsets = [0, 0], sizes = [40, 8], strides = [1, 1]} : vector<40x16xf32> to vector<40x8xf32>
    %6 = tpu.concatenate %4, %5 in 1 : vector<40x8xf32>, vector<40x8xf32> -> vector<40x16xf32>
    %7 = arith.truncf %6 : vector<40x16xf32> to vector<40x16xbf16>
    %c96 = arith.constant 96 : index
    %c0_5 = arith.constant 0 : index
    %8 = vector.load %arg0[%c96, %c0_5] : memref<400x64xbf16, #tpu.memory_space<vmem>>, vector<16x48xbf16>
    %cst_6 = arith.constant dense<0.000000e+00> : vector<40x48xf32>
    %9 = tpu.matmul %7, %8, %cst_6 {dimension_numbers = #tpu.dot_dimension_numbers<[1], [0], [0], [1], [0, 0, 1, 1], [], []>} : vector<40x16xbf16>, vector<16x48xbf16>, vector<40x48xf32> -> vector<40x48xf32>
    %c112 = arith.constant 112 : index
    %c0_7 = arith.constant 0 : index
    %10 = vector.load %arg0[%c112, %c0_7] : memref<400x64xbf16, #tpu.memory_space<vmem>>, vector<1x48xbf16>
    %11 = arith.extf %10 : vector<1x48xbf16> to vector<1x48xf32>
    %12 = vector.broadcast %11 : vector<1x48xf32> to vector<40x48xf32>
    %13 = arith.addf %9, %12 : vector<40x48xf32>
    %14 = vector.extract_strided_slice %13 {offsets = [0, 0], sizes = [40, 32], strides = [1, 1]} : vector<40x48xf32> to vector<40x32xf32>
    %15 = arith.negf %14 : vector<40x32xf32>
    %16 = math.exp %15 : vector<40x32xf32>
    %cst_8 = arith.constant 1.000000e+00 : f32
    %17 = vector.broadcast %cst_8 : f32 to vector<40x32xf32>
    %18 = arith.addf %17, %16 : vector<40x32xf32>
    %19 = arith.divf %17, %18 : vector<40x32xf32>
    %20 = vector.extract_strided_slice %19 {offsets = [0, 0], sizes = [40, 16], strides = [1, 1]} : vector<40x32xf32> to vector<40x16xf32>
    %21 = vector.extract_strided_slice %19 {offsets = [0, 16], sizes = [40, 16], strides = [1, 1]} : vector<40x32xf32> to vector<40x16xf32>
    %22 = arith.mulf %0, %21 : vector<40x16xf32>
    %23 = arith.truncf %22 : vector<40x16xf32> to vector<40x16xbf16>
    %c128 = arith.constant 128 : index
    %c0_9 = arith.constant 0 : index
    %24 = vector.load %arg0[%c128, %c0_9] : memref<400x64xbf16, #tpu.memory_space<vmem>>, vector<16x16xbf16>
    %cst_10 = arith.constant dense<0.000000e+00> : vector<40x16xf32>
    %25 = tpu.matmul %23, %24, %cst_10 {dimension_numbers = #tpu.dot_dimension_numbers<[1], [0], [0], [1], [0, 0, 1, 1], [], []>} : vector<40x16xbf16>, vector<16x16xbf16>, vector<40x16xf32> -> vector<40x16xf32>
    %26 = vector.extract_strided_slice %13 {offsets = [0, 32], sizes = [40, 16], strides = [1, 1]} : vector<40x48xf32> to vector<40x16xf32>
    %27 = arith.addf %26, %25 : vector<40x16xf32>
    %28 = math.tanh %27 : vector<40x16xf32>
    %29 = arith.mulf %20, %0 : vector<40x16xf32>
    %cst_11 = arith.constant 1.000000e+00 : f32
    %30 = vector.broadcast %cst_11 : f32 to vector<40x16xf32>
    %31 = arith.subf %30, %20 : vector<40x16xf32>
    %32 = arith.mulf %31, %28 : vector<40x16xf32>
    %33 = arith.addf %29, %32 : vector<40x16xf32>
    %34 = arith.mulf %33, %1 : vector<40x16xf32>
    %35 = vector.extract_strided_slice %34 {offsets = [0, 0], sizes = [8, 16], strides = [1, 1]} : vector<40x16xf32> to vector<8x16xf32>
    %36 = vector.extract_strided_slice %34 {offsets = [8, 0], sizes = [8, 16], strides = [1, 1]} : vector<40x16xf32> to vector<8x16xf32>
    %37 = arith.addf %35, %36 : vector<8x16xf32>
    %38 = vector.extract_strided_slice %34 {offsets = [16, 0], sizes = [8, 16], strides = [1, 1]} : vector<40x16xf32> to vector<8x16xf32>
    %39 = arith.addf %37, %38 : vector<8x16xf32>
    %40 = vector.extract_strided_slice %34 {offsets = [24, 0], sizes = [8, 16], strides = [1, 1]} : vector<40x16xf32> to vector<8x16xf32>
    %41 = arith.addf %39, %40 : vector<8x16xf32>
    %42 = vector.extract_strided_slice %34 {offsets = [32, 0], sizes = [8, 16], strides = [1, 1]} : vector<40x16xf32> to vector<8x16xf32>
    %43 = arith.addf %41, %42 : vector<8x16xf32>
    %44 = arith.truncf %43 : vector<8x16xf32> to vector<8x16xbf16>
    %45 = vector.extract_strided_slice %44 {offsets = [0, 0], sizes = [8, 8], strides = [1, 1]} : vector<8x16xbf16> to vector<8x8xbf16>
    %c144 = arith.constant 144 : index
    %c0_12 = arith.constant 0 : index
    %46 = vector.load %arg0[%c144, %c0_12] : memref<400x64xbf16, #tpu.memory_space<vmem>>, vector<8x64xbf16>
    %cst_13 = arith.constant dense<0.000000e+00> : vector<8x64xf32>
    %47 = tpu.matmul %45, %46, %cst_13 {dimension_numbers = #tpu.dot_dimension_numbers<[1], [0], [0], [1], [0, 0, 1, 1], [], []>} : vector<8x8xbf16>, vector<8x64xbf16>, vector<8x64xf32> -> vector<8x64xf32>
    %48 = vector.extract_strided_slice %44 {offsets = [0, 8], sizes = [8, 8], strides = [1, 1]} : vector<8x16xbf16> to vector<8x8xbf16>
    %c160 = arith.constant 160 : index
    %c0_14 = arith.constant 0 : index
    %49 = vector.load %arg0[%c160, %c0_14] : memref<400x64xbf16, #tpu.memory_space<vmem>>, vector<8x64xbf16>
    %cst_15 = arith.constant dense<0.000000e+00> : vector<8x64xf32>
    %50 = tpu.matmul %48, %49, %cst_15 {dimension_numbers = #tpu.dot_dimension_numbers<[1], [0], [0], [1], [0, 0, 1, 1], [], []>} : vector<8x8xbf16>, vector<8x64xbf16>, vector<8x64xf32> -> vector<8x64xf32>
    %51 = arith.mulf %47, %50 : vector<8x64xf32>
    %52 = arith.truncf %51 : vector<8x64xf32> to vector<8x64xbf16>
    %c176 = arith.constant 176 : index
    %c0_16 = arith.constant 0 : index
    %53 = vector.load %arg0[%c176, %c0_16] : memref<400x64xbf16, #tpu.memory_space<vmem>>, vector<64x32xbf16>
    %cst_17 = arith.constant dense<0.000000e+00> : vector<8x32xf32>
    %54 = tpu.matmul %52, %53, %cst_17 {dimension_numbers = #tpu.dot_dimension_numbers<[1], [0], [0], [1], [0, 0, 1, 1], [], []>} : vector<8x64xbf16>, vector<64x32xbf16>, vector<8x32xf32> -> vector<8x32xf32>
    %c240 = arith.constant 240 : index
    %c0_18 = arith.constant 0 : index
    %55 = vector.load %arg0[%c240, %c0_18] : memref<400x64xbf16, #tpu.memory_space<vmem>>, vector<1x32xbf16>
    %56 = arith.extf %55 : vector<1x32xbf16> to vector<1x32xf32>
    %57 = vector.broadcast %56 : vector<1x32xf32> to vector<8x32xf32>
    %58 = arith.addf %54, %57 : vector<8x32xf32>
    %59 = arith.truncf %58 : vector<8x32xf32> to vector<8x32xbf16>
    %c256 = arith.constant 256 : index
    %c0_19 = arith.constant 0 : index
    %60 = vector.load %arg0[%c256, %c0_19] : memref<400x64xbf16, #tpu.memory_space<vmem>>, vector<32x64xbf16>
    %cst_20 = arith.constant dense<0.000000e+00> : vector<8x64xf32>
    %61 = tpu.matmul %59, %60, %cst_20 {dimension_numbers = #tpu.dot_dimension_numbers<[1], [0], [0], [1], [0, 0, 1, 1], [], []>} : vector<8x32xbf16>, vector<32x64xbf16>, vector<8x64xf32> -> vector<8x64xf32>
    %c304 = arith.constant 304 : index
    %c0_21 = arith.constant 0 : index
    %62 = vector.load %arg0[%c304, %c0_21] : memref<400x64xbf16, #tpu.memory_space<vmem>>, vector<1x64xbf16>
    %63 = arith.extf %62 : vector<1x64xbf16> to vector<1x64xf32>
    %64 = vector.broadcast %63 : vector<1x64xf32> to vector<8x64xf32>
    %65 = arith.addf %61, %64 : vector<8x64xf32>
    %c288 = arith.constant 288 : index
    %c0_22 = arith.constant 0 : index
    %66 = vector.load %arg0[%c288, %c0_22] : memref<400x64xbf16, #tpu.memory_space<vmem>>, vector<16x64xbf16>
    %cst_23 = arith.constant 5.000000e-01 : f32
    %67 = vector.broadcast %cst_23 : f32 to vector<1x16xf32>
    %cst_24 = arith.constant 5.000000e-01 : f32
    %68 = vector.broadcast %cst_24 : f32 to vector<1x16xf32>
    %cst_25 = arith.constant 1.000000e+00 : f32
    %69 = vector.broadcast %cst_25 : f32 to vector<1x16xf32>
    %cst_26 = arith.constant 5.000000e-01 : f32
    %70 = vector.broadcast %cst_26 : f32 to vector<1x16xf32>
    %71 = tpu.concatenate %67, %68, %69, %70 in 1 : vector<1x16xf32>, vector<1x16xf32>, vector<1x16xf32>, vector<1x16xf32> -> vector<1x64xf32>
    %cst_27 = arith.constant 5.000000e-01 : f32
    %72 = vector.broadcast %cst_27 : f32 to vector<1x16xf32>
    %cst_28 = arith.constant 5.000000e-01 : f32
    %73 = vector.broadcast %cst_28 : f32 to vector<1x16xf32>
    %cst_29 = arith.constant 0.000000e+00 : f32
    %74 = vector.broadcast %cst_29 : f32 to vector<1x16xf32>
    %cst_30 = arith.constant 5.000000e-01 : f32
    %75 = vector.broadcast %cst_30 : f32 to vector<1x16xf32>
    %76 = tpu.concatenate %72, %73, %74, %75 in 1 : vector<1x16xf32>, vector<1x16xf32>, vector<1x16xf32>, vector<1x16xf32> -> vector<1x64xf32>
    %cst_31 = arith.constant 0.000000e+00 : f32
    %77 = vector.broadcast %cst_31 : f32 to vector<1x16xf32>
    %cst_32 = arith.constant 0.000000e+00 : f32
    %78 = vector.broadcast %cst_32 : f32 to vector<1x16xf32>
    %79 = vector.extract_strided_slice %65 {offsets = [0, 0], sizes = [1, 64], strides = [1, 1]} : vector<8x64xf32> to vector<1x64xf32>
    %80 = arith.truncf %77 : vector<1x16xf32> to vector<1x16xbf16>
    %cst_33 = arith.constant dense<0.000000e+00> : vector<1x64xf32>
    %81 = tpu.matmul %80, %66, %cst_33 {dimension_numbers = #tpu.dot_dimension_numbers<[1], [0], [0], [1], [0, 0, 1, 1], [], []>} : vector<1x16xbf16>, vector<16x64xbf16>, vector<1x64xf32> -> vector<1x64xf32>
    %82 = arith.addf %79, %81 : vector<1x64xf32>
    %83 = math.tanh %82 : vector<1x64xf32>
    %84 = arith.mulf %83, %71 : vector<1x64xf32>
    %85 = arith.addf %84, %76 : vector<1x64xf32>
    %86 = vector.extract_strided_slice %85 {offsets = [0, 0], sizes = [1, 16], strides = [1, 1]} : vector<1x64xf32> to vector<1x16xf32>
    %87 = vector.extract_strided_slice %85 {offsets = [0, 16], sizes = [1, 16], strides = [1, 1]} : vector<1x64xf32> to vector<1x16xf32>
    %88 = vector.extract_strided_slice %85 {offsets = [0, 32], sizes = [1, 16], strides = [1, 1]} : vector<1x64xf32> to vector<1x16xf32>
    %89 = vector.extract_strided_slice %85 {offsets = [0, 48], sizes = [1, 16], strides = [1, 1]} : vector<1x64xf32> to vector<1x16xf32>
    %90 = arith.mulf %87, %78 : vector<1x16xf32>
    %91 = arith.mulf %86, %88 : vector<1x16xf32>
    %92 = arith.addf %90, %91 : vector<1x16xf32>
    %93 = math.tanh %92 : vector<1x16xf32>
    %94 = arith.mulf %89, %93 : vector<1x16xf32>
    %95 = vector.extract_strided_slice %65 {offsets = [1, 0], sizes = [1, 64], strides = [1, 1]} : vector<8x64xf32> to vector<1x64xf32>
    %96 = arith.truncf %94 : vector<1x16xf32> to vector<1x16xbf16>
    %cst_34 = arith.constant dense<0.000000e+00> : vector<1x64xf32>
    %97 = tpu.matmul %96, %66, %cst_34 {dimension_numbers = #tpu.dot_dimension_numbers<[1], [0], [0], [1], [0, 0, 1, 1], [], []>} : vector<1x16xbf16>, vector<16x64xbf16>, vector<1x64xf32> -> vector<1x64xf32>
    %98 = arith.addf %95, %97 : vector<1x64xf32>
    %99 = math.tanh %98 : vector<1x64xf32>
    %100 = arith.mulf %99, %71 : vector<1x64xf32>
    %101 = arith.addf %100, %76 : vector<1x64xf32>
    %102 = vector.extract_strided_slice %101 {offsets = [0, 0], sizes = [1, 16], strides = [1, 1]} : vector<1x64xf32> to vector<1x16xf32>
    %103 = vector.extract_strided_slice %101 {offsets = [0, 16], sizes = [1, 16], strides = [1, 1]} : vector<1x64xf32> to vector<1x16xf32>
    %104 = vector.extract_strided_slice %101 {offsets = [0, 32], sizes = [1, 16], strides = [1, 1]} : vector<1x64xf32> to vector<1x16xf32>
    %105 = vector.extract_strided_slice %101 {offsets = [0, 48], sizes = [1, 16], strides = [1, 1]} : vector<1x64xf32> to vector<1x16xf32>
    %106 = arith.mulf %103, %92 : vector<1x16xf32>
    %107 = arith.mulf %102, %104 : vector<1x16xf32>
    %108 = arith.addf %106, %107 : vector<1x16xf32>
    %109 = math.tanh %108 : vector<1x16xf32>
    %110 = arith.mulf %105, %109 : vector<1x16xf32>
    %111 = vector.extract_strided_slice %65 {offsets = [2, 0], sizes = [1, 64], strides = [1, 1]} : vector<8x64xf32> to vector<1x64xf32>
    %112 = arith.truncf %110 : vector<1x16xf32> to vector<1x16xbf16>
    %cst_35 = arith.constant dense<0.000000e+00> : vector<1x64xf32>
    %113 = tpu.matmul %112, %66, %cst_35 {dimension_numbers = #tpu.dot_dimension_numbers<[1], [0], [0], [1], [0, 0, 1, 1], [], []>} : vector<1x16xbf16>, vector<16x64xbf16>, vector<1x64xf32> -> vector<1x64xf32>
    %114 = arith.addf %111, %113 : vector<1x64xf32>
    %115 = math.tanh %114 : vector<1x64xf32>
    %116 = arith.mulf %115, %71 : vector<1x64xf32>
    %117 = arith.addf %116, %76 : vector<1x64xf32>
    %118 = vector.extract_strided_slice %117 {offsets = [0, 0], sizes = [1, 16], strides = [1, 1]} : vector<1x64xf32> to vector<1x16xf32>
    %119 = vector.extract_strided_slice %117 {offsets = [0, 16], sizes = [1, 16], strides = [1, 1]} : vector<1x64xf32> to vector<1x16xf32>
    %120 = vector.extract_strided_slice %117 {offsets = [0, 32], sizes = [1, 16], strides = [1, 1]} : vector<1x64xf32> to vector<1x16xf32>
    %121 = vector.extract_strided_slice %117 {offsets = [0, 48], sizes = [1, 16], strides = [1, 1]} : vector<1x64xf32> to vector<1x16xf32>
    %122 = arith.mulf %119, %108 : vector<1x16xf32>
    %123 = arith.mulf %118, %120 : vector<1x16xf32>
    %124 = arith.addf %122, %123 : vector<1x16xf32>
    %125 = math.tanh %124 : vector<1x16xf32>
    %126 = arith.mulf %121, %125 : vector<1x16xf32>
    %127 = vector.extract_strided_slice %65 {offsets = [3, 0], sizes = [1, 64], strides = [1, 1]} : vector<8x64xf32> to vector<1x64xf32>
    %128 = arith.truncf %126 : vector<1x16xf32> to vector<1x16xbf16>
    %cst_36 = arith.constant dense<0.000000e+00> : vector<1x64xf32>
    %129 = tpu.matmul %128, %66, %cst_36 {dimension_numbers = #tpu.dot_dimension_numbers<[1], [0], [0], [1], [0, 0, 1, 1], [], []>} : vector<1x16xbf16>, vector<16x64xbf16>, vector<1x64xf32> -> vector<1x64xf32>
    %130 = arith.addf %127, %129 : vector<1x64xf32>
    %131 = math.tanh %130 : vector<1x64xf32>
    %132 = arith.mulf %131, %71 : vector<1x64xf32>
    %133 = arith.addf %132, %76 : vector<1x64xf32>
    %134 = vector.extract_strided_slice %133 {offsets = [0, 0], sizes = [1, 16], strides = [1, 1]} : vector<1x64xf32> to vector<1x16xf32>
    %135 = vector.extract_strided_slice %133 {offsets = [0, 16], sizes = [1, 16], strides = [1, 1]} : vector<1x64xf32> to vector<1x16xf32>
    %136 = vector.extract_strided_slice %133 {offsets = [0, 32], sizes = [1, 16], strides = [1, 1]} : vector<1x64xf32> to vector<1x16xf32>
    %137 = vector.extract_strided_slice %133 {offsets = [0, 48], sizes = [1, 16], strides = [1, 1]} : vector<1x64xf32> to vector<1x16xf32>
    %138 = arith.mulf %135, %124 : vector<1x16xf32>
    %139 = arith.mulf %134, %136 : vector<1x16xf32>
    %140 = arith.addf %138, %139 : vector<1x16xf32>
    %141 = math.tanh %140 : vector<1x16xf32>
    %142 = arith.mulf %137, %141 : vector<1x16xf32>
    %143 = vector.extract_strided_slice %65 {offsets = [4, 0], sizes = [1, 64], strides = [1, 1]} : vector<8x64xf32> to vector<1x64xf32>
    %144 = arith.truncf %142 : vector<1x16xf32> to vector<1x16xbf16>
    %cst_37 = arith.constant dense<0.000000e+00> : vector<1x64xf32>
    %145 = tpu.matmul %144, %66, %cst_37 {dimension_numbers = #tpu.dot_dimension_numbers<[1], [0], [0], [1], [0, 0, 1, 1], [], []>} : vector<1x16xbf16>, vector<16x64xbf16>, vector<1x64xf32> -> vector<1x64xf32>
    %146 = arith.addf %143, %145 : vector<1x64xf32>
    %147 = math.tanh %146 : vector<1x64xf32>
    %148 = arith.mulf %147, %71 : vector<1x64xf32>
    %149 = arith.addf %148, %76 : vector<1x64xf32>
    %150 = vector.extract_strided_slice %149 {offsets = [0, 0], sizes = [1, 16], strides = [1, 1]} : vector<1x64xf32> to vector<1x16xf32>
    %151 = vector.extract_strided_slice %149 {offsets = [0, 16], sizes = [1, 16], strides = [1, 1]} : vector<1x64xf32> to vector<1x16xf32>
    %152 = vector.extract_strided_slice %149 {offsets = [0, 32], sizes = [1, 16], strides = [1, 1]} : vector<1x64xf32> to vector<1x16xf32>
    %153 = vector.extract_strided_slice %149 {offsets = [0, 48], sizes = [1, 16], strides = [1, 1]} : vector<1x64xf32> to vector<1x16xf32>
    %154 = arith.mulf %151, %140 : vector<1x16xf32>
    %155 = arith.mulf %150, %152 : vector<1x16xf32>
    %156 = arith.addf %154, %155 : vector<1x16xf32>
    %157 = math.tanh %156 : vector<1x16xf32>
    %158 = arith.mulf %153, %157 : vector<1x16xf32>
    %159 = vector.extract_strided_slice %65 {offsets = [5, 0], sizes = [1, 64], strides = [1, 1]} : vector<8x64xf32> to vector<1x64xf32>
    %160 = arith.truncf %158 : vector<1x16xf32> to vector<1x16xbf16>
    %cst_38 = arith.constant dense<0.000000e+00> : vector<1x64xf32>
    %161 = tpu.matmul %160, %66, %cst_38 {dimension_numbers = #tpu.dot_dimension_numbers<[1], [0], [0], [1], [0, 0, 1, 1], [], []>} : vector<1x16xbf16>, vector<16x64xbf16>, vector<1x64xf32> -> vector<1x64xf32>
    %162 = arith.addf %159, %161 : vector<1x64xf32>
    %163 = math.tanh %162 : vector<1x64xf32>
    %164 = arith.mulf %163, %71 : vector<1x64xf32>
    %165 = arith.addf %164, %76 : vector<1x64xf32>
    %166 = vector.extract_strided_slice %165 {offsets = [0, 0], sizes = [1, 16], strides = [1, 1]} : vector<1x64xf32> to vector<1x16xf32>
    %167 = vector.extract_strided_slice %165 {offsets = [0, 16], sizes = [1, 16], strides = [1, 1]} : vector<1x64xf32> to vector<1x16xf32>
    %168 = vector.extract_strided_slice %165 {offsets = [0, 32], sizes = [1, 16], strides = [1, 1]} : vector<1x64xf32> to vector<1x16xf32>
    %169 = vector.extract_strided_slice %165 {offsets = [0, 48], sizes = [1, 16], strides = [1, 1]} : vector<1x64xf32> to vector<1x16xf32>
    %170 = arith.mulf %167, %156 : vector<1x16xf32>
    %171 = arith.mulf %166, %168 : vector<1x16xf32>
    %172 = arith.addf %170, %171 : vector<1x16xf32>
    %173 = math.tanh %172 : vector<1x16xf32>
    %174 = arith.mulf %169, %173 : vector<1x16xf32>
    %175 = vector.extract_strided_slice %65 {offsets = [6, 0], sizes = [1, 64], strides = [1, 1]} : vector<8x64xf32> to vector<1x64xf32>
    %176 = arith.truncf %174 : vector<1x16xf32> to vector<1x16xbf16>
    %cst_39 = arith.constant dense<0.000000e+00> : vector<1x64xf32>
    %177 = tpu.matmul %176, %66, %cst_39 {dimension_numbers = #tpu.dot_dimension_numbers<[1], [0], [0], [1], [0, 0, 1, 1], [], []>} : vector<1x16xbf16>, vector<16x64xbf16>, vector<1x64xf32> -> vector<1x64xf32>
    %178 = arith.addf %175, %177 : vector<1x64xf32>
    %179 = math.tanh %178 : vector<1x64xf32>
    %180 = arith.mulf %179, %71 : vector<1x64xf32>
    %181 = arith.addf %180, %76 : vector<1x64xf32>
    %182 = vector.extract_strided_slice %181 {offsets = [0, 0], sizes = [1, 16], strides = [1, 1]} : vector<1x64xf32> to vector<1x16xf32>
    %183 = vector.extract_strided_slice %181 {offsets = [0, 16], sizes = [1, 16], strides = [1, 1]} : vector<1x64xf32> to vector<1x16xf32>
    %184 = vector.extract_strided_slice %181 {offsets = [0, 32], sizes = [1, 16], strides = [1, 1]} : vector<1x64xf32> to vector<1x16xf32>
    %185 = vector.extract_strided_slice %181 {offsets = [0, 48], sizes = [1, 16], strides = [1, 1]} : vector<1x64xf32> to vector<1x16xf32>
    %186 = arith.mulf %183, %172 : vector<1x16xf32>
    %187 = arith.mulf %182, %184 : vector<1x16xf32>
    %188 = arith.addf %186, %187 : vector<1x16xf32>
    %189 = math.tanh %188 : vector<1x16xf32>
    %190 = arith.mulf %185, %189 : vector<1x16xf32>
    %191 = vector.extract_strided_slice %65 {offsets = [7, 0], sizes = [1, 64], strides = [1, 1]} : vector<8x64xf32> to vector<1x64xf32>
    %192 = arith.truncf %190 : vector<1x16xf32> to vector<1x16xbf16>
    %cst_40 = arith.constant dense<0.000000e+00> : vector<1x64xf32>
    %193 = tpu.matmul %192, %66, %cst_40 {dimension_numbers = #tpu.dot_dimension_numbers<[1], [0], [0], [1], [0, 0, 1, 1], [], []>} : vector<1x16xbf16>, vector<16x64xbf16>, vector<1x64xf32> -> vector<1x64xf32>
    %194 = arith.addf %191, %193 : vector<1x64xf32>
    %195 = math.tanh %194 : vector<1x64xf32>
    %196 = arith.mulf %195, %71 : vector<1x64xf32>
    %197 = arith.addf %196, %76 : vector<1x64xf32>
    %198 = vector.extract_strided_slice %197 {offsets = [0, 0], sizes = [1, 16], strides = [1, 1]} : vector<1x64xf32> to vector<1x16xf32>
    %199 = vector.extract_strided_slice %197 {offsets = [0, 16], sizes = [1, 16], strides = [1, 1]} : vector<1x64xf32> to vector<1x16xf32>
    %200 = vector.extract_strided_slice %197 {offsets = [0, 32], sizes = [1, 16], strides = [1, 1]} : vector<1x64xf32> to vector<1x16xf32>
    %201 = vector.extract_strided_slice %197 {offsets = [0, 48], sizes = [1, 16], strides = [1, 1]} : vector<1x64xf32> to vector<1x16xf32>
    %202 = arith.mulf %199, %188 : vector<1x16xf32>
    %203 = arith.mulf %198, %200 : vector<1x16xf32>
    %204 = arith.addf %202, %203 : vector<1x16xf32>
    %205 = math.tanh %204 : vector<1x16xf32>
    %206 = arith.mulf %201, %205 : vector<1x16xf32>
    %207 = arith.truncf %206 : vector<1x16xf32> to vector<1x16xbf16>
    %c320 = arith.constant 320 : index
    %c0_41 = arith.constant 0 : index
    %208 = vector.load %arg0[%c320, %c0_41] : memref<400x64xbf16, #tpu.memory_space<vmem>>, vector<16x32xbf16>
    %cst_42 = arith.constant dense<0.000000e+00> : vector<1x32xf32>
    %209 = tpu.matmul %207, %208, %cst_42 {dimension_numbers = #tpu.dot_dimension_numbers<[1], [0], [0], [1], [0, 0, 1, 1], [], []>} : vector<1x16xbf16>, vector<16x32xbf16>, vector<1x32xf32> -> vector<1x32xf32>
    %c336 = arith.constant 336 : index
    %c0_43 = arith.constant 0 : index
    %210 = vector.load %arg0[%c336, %c0_43] : memref<400x64xbf16, #tpu.memory_space<vmem>>, vector<1x32xbf16>
    %211 = arith.extf %210 : vector<1x32xbf16> to vector<1x32xf32>
    %212 = arith.addf %209, %211 : vector<1x32xf32>
    %cst_44 = arith.constant 0.000000e+00 : f32
    %213 = vector.broadcast %cst_44 : f32 to vector<1x32xf32>
    %214 = arith.maximumf %212, %213 : vector<1x32xf32>
    %215 = arith.truncf %214 : vector<1x32xf32> to vector<1x32xbf16>
    %c352 = arith.constant 352 : index
    %c0_45 = arith.constant 0 : index
    %216 = vector.load %arg0[%c352, %c0_45] : memref<400x64xbf16, #tpu.memory_space<vmem>>, vector<32x4xbf16>
    %cst_46 = arith.constant dense<0.000000e+00> : vector<1x4xf32>
    %217 = tpu.matmul %215, %216, %cst_46 {dimension_numbers = #tpu.dot_dimension_numbers<[1], [0], [0], [1], [0, 0, 1, 1], [], []>} : vector<1x32xbf16>, vector<32x4xbf16>, vector<1x4xf32> -> vector<1x4xf32>
    %c384 = arith.constant 384 : index
    %c0_47 = arith.constant 0 : index
    %218 = vector.load %arg0[%c384, %c0_47] : memref<400x64xbf16, #tpu.memory_space<vmem>>, vector<1x4xbf16>
    %219 = arith.extf %218 : vector<1x4xbf16> to vector<1x4xf32>
    %220 = arith.addf %217, %219 : vector<1x4xf32>
    %c0_48 = arith.constant 0 : index
    %c0_49 = arith.constant 0 : index
    %221 = vector.load %arg2[%c0_48, %c0_49] : memref<1x4xf32, #tpu.memory_space<vmem>>, vector<1x4xf32>
    tpu.vector_store %arg2[%c0_48, %c0_49], %220 {strides = array<i32>} : memref<1x4xf32, #tpu.memory_space<vmem>>, vector<1x4xf32>,
    return
  }
}

</mosaic_0001>

<bundles_post_ra>
// kernel: temporal_gat_rnn_forward.1
= control target key start
LH: loop header
LB: loop body
LE: loop exit
PB: predicated region body
PF: predicated region fallthrough
CT: control target
= control target key end

     0   :  { %vm66_vm0 = vcmask 1043456   ;;  %v1840_v1 = vmov 0.0   ;;  %vm1841_vm1 = vmmov 0   ;;  %vm56_vm2 = vcmask 326656   ;;  %s1842_s27 = smov 8   ;;  %s2234_s0 = inlined_call_operand.vmem [shape: bf16[400,64], index: 0, kind: input, shape index: {}]   ;;  %s2235_s1 = inlined_call_operand.vmem [shape: f32[40,32], index: 1, kind: input, shape index: {}]   ;;  %s2236_s2 = inlined_call_operand.hbm [shape: f32[1,4], index: 2, kind: output, shape index: {}]  }
   0x1   :  { %v1738_v0 = vld [vmem:[%s2234_s0 + $0x28] ss:$0 sps:$4 sm:$0xff]   ;;  %1576 = vmatprep.subr.bf16.mxu0 %v1840_v1  ;;  %1594 = vmatprep.subr.bf16.mxu1 %v1840_v1  ;;  %v1739_v3 = vld [vmem:[%s2234_s0 + $0x20] sm:$0xff]   ;;  %v1740_v4 = vld [vmem:[%s2234_s0 + $0x18] sm:$0xff]  }
   0x2   :  { %v68_v2 = vsel %vm66_vm0, %v1738_v0, 0  ;;  %1582 = vmatprep.mubr.msk.bf16.mxu0 %vm1841_vm1, %v1840_v1  ;;  %1596 = vmatprep.mubr.msk.bf16.mxu1 %vm1841_vm1, %v1840_v1  ;;  %v1887_v5 = vld [vmem:[%s2235_s1] sm:$0xff]  ;;  %v1892_v6 = vld [vmem:[%s2235_s1 + $0x8] sm:$0xff]  ;;  %v1897_v7 = vld [vmem:[%s2235_s1 + $0x10] sm:$0xff] }
   0x3   :  { %1577 = vmatpush3.bf16.msra.mxu0 %v68_v2  ;;  %v1902_v8 = vld [vmem:[%s2235_s1 + $0x18] sm:$0xff]  ;;  %v1728_v9 = vpack.i.bf16 %v1892_v6, %v1887_v5  ;;  %v1909_v10 = vld [vmem:[%s2235_s1 + $0x20] sm:$0xff] }
   0x4   :  { %1578 = vmatprep.subr.bf16.mxu0 %v1840_v1  ;;  %v1741_v11 = vld [vmem:[%s2234_s0] sm:$0xff]   ;;  %139 = vrot.lane.b32.xlu1 %v1909_v10, %s1842_s27  ;;  %v1733_v12 = vpack.i.bf16 %v1902_v8, %v1897_v7 }
   0x5   :  { %1729 = vrot.lane.b32.xlu0 %v1728_v9, %s1842_s27 }
   0x7   :  { %1579 = vmatpush3.bf16.msra.mxu0 %v1739_v3 }
   0x8   :  { %1580 = vmatprep.subr.bf16.mxu0 %v1840_v1 }
   0x9   :  { %1734 = vrot.lane.b32.xlu0 %v1733_v12, %s1842_s27 }
   0xb   :  { %1581 = vmatpush3.bf16.msra.mxu0 %v1740_v4 }
   0xc   :  { %1622 = vmatprep.subr.bf16.mxu0 %v1840_v1 }
   0xe   :  { %1583 = vmatmul.mubr.msk.bf16.vlgmr.msra.gmra.mxu0 %vm56_vm2, %v1741_v11 }
   0xf   :  { %1586 = vmatprep.mubr.msk.bf16.mxu0 %vm1841_vm1, %v1840_v1 }
  0x10   :  { %7 = vsyncpa [#allocation3], 0  ;;  %v1742_v13 = vld [vmem:[%s2234_s0 + $0x8] sm:$0xff]   ;;  %v1743_v14 = vld [vmem:[%s2234_s0 + $0x10] ss:$0 sps:$4 sm:$0xff]   ;;  %vm146_vm3 = vcmask 64512   ;;  %v159_v44 = vlaneseq }
  0x11   :  { %v1744_v15 = vld [vmem:[%s2234_s0 + $0x30] sm:$0xff]   ;;  %vm169_vm4 = vcmask 130048   ;;  %v1745_v43 = vld [vmem:[%s2234_s0 + $0x40] sm:$0xff]   ;;  %v157_v46 = vld [vmem:[%s2234_s0 + $0x38] sm:$0x1]  ;;  %s1843_s9 = smov 112  }
  0x12   :  { %1595 = vmatpush3.bf16.msra.mxu1 %v1744_v15  ;;  %v160_v45 = vshrl.u32 %v159_v44, 7  ;;  %v158_v47 = vunpack.c.l.bf16 %v157_v46  ;;  %s1844_s10 = smov 32   ;;  %s1845_s11 = smov 96   ;;  %vm598_vm5 = vcmask 523264   ;;  %vm665_vm6 = vcmask 261120  }
  0x13   :  { %1608 = vmatprep.subr.bf16.mxu1 %v1840_v1  ;;  %s1846_s16 = smov 120   ;;  %vm712_vm7 = vcmask 392192   ;;  %s1849_s6 = smov 16   ;;  %vm1468_vm8 = vcmask 24576  }
  0x14   :  { %v1959_v48 = vsub.s32 0, %v160_v45  ;;  %s1850_s7 = smov 80   ;;  %s1851_s18 = smov [#allocation2]  }
  0x15   :  { %s1476_s19 = sshll.u32 %s1851_s18, 4  ;;  %s1477_s19 = int_to_ptr.vmem [resolvable:$true] %s1476_s19 }
  0x16   :  { %1587 = vmatmul.mubr.msk.bf16.gmra.mxu0 %vm56_vm2, %v1742_v13  ;;  %v162_v49 = vrot.slane %v158_v47, %v1959_v48  ;;  %s1818_s20 = scalar_lea.vmem %s1477_s19, 16  ;;  %s1822_s21 = scalar_lea.vmem %s1477_s19, 32 }
  0x17   :  { %1590 = vmatprep.mubr.msk.bf16.mxu0 %vm1841_vm1, %v1840_v1  ;;  %p1819_p0 = scmp.ne.s32.totalorder %s1477_s19, %s1818_s20  ;;  %p1823_p1 = scmp.lt.s32.totalorder %s1477_s19, %s1477_s19 }
  0x18   :  { %p1824_p2 = scmp.lt.s32.totalorder %s1822_s21, %s1818_s20 }
  0x1a   :  { %p1825_p3 = por %p1824_p2, %p1823_p1 }
  0x1c   :  { %p1826_p4 = pnand %p1825_p3, %p1819_p0 }
  0x1e   :  { %1591 = vmatmul.mubr.msk.bf16.gmra.mxu0 %vm56_vm2, %v1743_v14 }
  0x1f   :  { %1624 = vmatprep.mubr.msk.bf16.mxu0 %vm1841_vm1, %v1840_v1 }
  0x76   :  { %v140_v36 = vpop.permute.xlu1 %139 }
  0x77   :  { %v1730_v16 = vpop.permute.xlu0 %1729 }
  0x78   :  { %v1732_v18 = vunpack.i.h.bf16 %v1730_v16  ;;  %v1731_v19 = vunpack.i.l.bf16 %v1730_v16 }
  0x7b   :  { %v1735_v26 = vpop.permute.xlu0 %1734 }
  0x7c   :  { %v1737_v28 = vunpack.i.h.bf16 %v1735_v26  ;;  %v1736_v29 = vunpack.i.l.bf16 %v1735_v26 }
  0xce   :  { %v104_v17 = vpop.f32.mrf.mxu0 }
  0xcf   :  { %v147_v22 = vsel %vm146_vm3, %v104_v17, %v1731_v19 }
  0xd0   :  { %v1584_v20 = vpop.f32.mrf.mxu0 }
  0xd2   :  { %v107_v21 = vpop.f32.mrf.mxu0 }
  0xd3   :  { %v148_v23 = vsel %vm146_vm3, %v107_v21, %v1732_v18 }
  0xd4   :  { %v152_v24 = vpack.c.bf16 %v148_v23, %v147_v22  ;;  %v1585_v25 = vpop.f32.mrf.mxu0 }
  0xd6   :  { %v112_v27 = vpop.f32.mrf.mxu0  ;;  %1597 = vmatmul.mubr.msk.bf16.vlgmr.msra.gmra.mxu1 %vm169_vm4, %v152_v24 }
  0xd7   :  { %1600 = vmatprep.mubr.msk.bf16.mxu1 %vm1841_vm1, %v1840_v1  ;;  %v149_v32 = vsel %vm146_vm3, %v112_v27, %v1736_v29  ;;  %1609 = vmatpush3.bf16.msra.mxu1 %v1745_v43 }
  0xd8   :  { %v1588_v30 = vpop.f32.mrf.mxu0  ;;  %1634 = vmatprep.subr.bf16.mxu1 %v1840_v1 }
  0xda   :  { %v115_v31 = vpop.f32.mrf.mxu0 }
  0xdb   :  { %v150_v33 = vsel %vm146_vm3, %v115_v31, %v1737_v28 }
  0xdc   :  { %v153_v34 = vpack.c.bf16 %v150_v33, %v149_v32  ;;  %v1589_v35 = vpop.f32.mrf.mxu0 }
  0xde   :  { %1601 = vmatmul.mubr.msk.bf16.gmra.mxu1 %vm169_vm4, %v153_v34  ;;  %v120_v37 = vpop.f32.mrf.mxu0 }
  0xdf   :  { %v151_v38 = vsel %vm146_vm3, %v120_v37, %v140_v36  ;;  %1604 = vmatprep.mubr.msk.bf16.mxu1 %vm1841_vm1, %v1840_v1 }
  0xe0   :  { %v1592_v39 = vpop.f32.mrf.mxu0  ;;  %v154_v40 = vpack.c.bf16 %v151_v38, %v151_v38 }
  0xe2   :  { %v123_v41 = vpop.f32.mrf.mxu0 }
  0xe4   :  { %v1593_v42 = vpop.f32.mrf.mxu0 }
  0xe6   :  { %1605 = vmatmul.mubr.msk.bf16.gmra.mxu1 %vm169_vm4, %v154_v40 }
  0xe7   :  { %1610 = vmatprep.mubr.msk.bf16.mxu1 %vm1841_vm1, %v1840_v1 }
 0x196   :  { %v213_v50 = vpop.f32.mrf.mxu1 }
 0x197   :  { %v1962_v51 = vadd.f32 %v213_v50, %v162_v49 }
 0x198   :  { %v1598_v52 = vpop.f32.mrf.mxu1 }
 0x199   :  { %v1497_v53 = vmul.f32 -1.442695, %v1962_v51 }
 0x19a   :  { %v216_v54 = vpop.f32.mrf.mxu1 }
 0x19b   :  { %1756 = vpow2.f32 %v1497_v53  ;;  %v1965_v55 = vadd.f32 %v216_v54, %v162_v49 }
 0x19c   :  { %v1599_v56 = vpop.f32.mrf.mxu1 }
 0x19d   :  { %v1498_v57 = vmul.f32 -1.442695, %v1965_v55 }
 0x19e   :  { %v221_v58 = vpop.f32.mrf.mxu1 }
 0x19f   :  { %1758 = vpow2.f32 %v1498_v57  ;;  %v1968_v59 = vadd.f32 %v221_v58, %v162_v49 }
 0x1a0   :  { %v1602_v60 = vpop.f32.mrf.mxu1 }
 0x1a1   :  { %v1499_v61 = vmul.f32 -1.442695, %v1968_v59 }
 0x1a2   :  { %v224_v62 = vpop.f32.mrf.mxu1 }
 0x1a3   :  { %1760 = vpow2.f32 %v1499_v61  ;;  %v1971_v63 = vadd.f32 %v224_v62, %v162_v49 }
 0x1a4   :  { %v1603_v0 = vpop.f32.mrf.mxu1 }
 0x1a5   :  { %v1500_v2 = vmul.f32 -1.442695, %v1971_v63 }
 0x1a6   :  { %v229_v3 = vpop.f32.mrf.mxu1 }
 0x1a7   :  { %1762 = vpow2.f32 %v1500_v2  ;;  %v1974_v4 = vadd.f32 %v229_v3, %v162_v49 }
 0x1a8   :  { %v1757_v9 = vpop.eup %1756  ;;  %v1606_v11 = vpop.f32.mrf.mxu1 }
 0x1a9   :  { %v250_v12 = vadd.f32 1.0, %v1757_v9  ;;  %v1501_v13 = vmul.f32 -1.442695, %v1974_v4 }
 0x1aa   :  { %v232_v14 = vpop.f32.mrf.mxu1 }
 0x1ab   :  { %1764 = vrcp.f32 %v250_v12 }
 0x1ac   :  { %v1759_v15 = vpop.eup %1758  ;;  %1766 = vpow2.f32 %v1501_v13  ;;  %v1607_v16 = vpop.f32.mrf.mxu1 }
 0x1ad   :  { %v251_v17 = vadd.f32 1.0, %v1759_v15 }
 0x1af   :  { %1768 = vrcp.f32 %v251_v17 }
 0x1b0   :  { %v1761_v18 = vpop.eup %1760 }
 0x1b1   :  { %v252_v19 = vadd.f32 1.0, %v1761_v18 }
 0x1b3   :  { %1770 = vrcp.f32 %v252_v19 }
 0x1b4   :  { %v1763_v20 = vpop.eup %1762 }
 0x1b5   :  { %v253_v21 = vadd.f32 1.0, %v1763_v20 }
 0x1b7   :  { %1772 = vrcp.f32 %v253_v21 }
 0x1b8   :  { %v1977_v22 = vpop.eup %1764 }
 0x1b9   :  { %v1767_v23 = vpop.eup %1766  ;;  %270 = vrot.lane.b32.xlu1 %v1977_v22, %s1843_s9  ;;  %v401_v16 = vsub.f32 1.0, %v1977_v22  ;;  %v396_v19 = vmul.f32 %v1977_v22, %v1887_v5 }
 0x1ba   :  { %v254_v24 = vadd.f32 1.0, %v1767_v23 }
 0x1bc   :  { %v1981_v25 = vpop.eup %1768  ;;  %1774 = vrcp.f32 %v254_v24 }
 0x1bd   :  { %272 = vrot.lane.b32.xlu0 %v1981_v25, %s1843_s9  ;;  %v402_v20 = vsub.f32 1.0, %v1981_v25  ;;  %v397_v24 = vmul.f32 %v1981_v25, %v1892_v6 }
 0x1c0   :  { %v1985_v26 = vpop.eup %1770 }
 0x1c1   :  { %274 = vrot.lane.b32.xlu1 %v1985_v26, %s1843_s9 }
 0x1c4   :  { %v1989_v27 = vpop.eup %1772 }
 0x1c5   :  { %276 = vrot.lane.b32.xlu0 %v1989_v27, %s1843_s9 }
 0x1c9   :  { %v1993_v28 = vpop.eup %1774 }
 0x1ca   :  { %278 = vrot.lane.b32.xlu1 %v1993_v28, %s1843_s9 }
 0x22b   :  { %v271_v29 = vpop.permute.xlu1 %270 }
 0x22c   :  { %v285_v31 = vmul.f32 %v271_v29, %v1887_v5 }
 0x22f   :  { %v273_v30 = vpop.permute.xlu0 %272 }
 0x230   :  { %v286_v32 = vmul.f32 %v273_v30, %v1892_v6 }
 0x232   :  { %v290_v33 = vpack.c.bf16 %v286_v32, %v285_v31 }
 0x233   :  { %v275_v34 = vpop.permute.xlu1 %274 }
 0x234   :  { %1611 = vmatmul.mubr.msk.bf16.vlgmr.msra.gmra.mxu1 %vm169_vm4, %v290_v33  ;;  %v287_v36 = vmul.f32 %v275_v34, %v1897_v7  ;;  %v403_v34 = vsub.f32 1.0, %v1985_v26 }
 0x235   :  { %1614 = vmatprep.mubr.msk.bf16.mxu1 %vm1841_vm1, %v1840_v1 }
 0x237   :  { %v277_v35 = vpop.permute.xlu0 %276 }
 0x238   :  { %v288_v37 = vmul.f32 %v277_v35, %v1902_v8 }
 0x23a   :  { %v291_v38 = vpack.c.bf16 %v288_v37, %v287_v36 }
 0x23c   :  { %1615 = vmatmul.mubr.msk.bf16.gmra.mxu1 %vm169_vm4, %v291_v38  ;;  %v279_v39 = vpop.permute.xlu1 %278  ;;  %v404_v38 = vsub.f32 1.0, %v1989_v27 }
 0x23d   :  { %v289_v40 = vmul.f32 %v279_v39, %v1909_v10  ;;  %1618 = vmatprep.mubr.msk.bf16.mxu1 %vm1841_vm1, %v1840_v1  ;;  %v405_v39 = vsub.f32 1.0, %v1993_v28 }
 0x23f   :  { %v292_v41 = vpack.c.bf16 %v289_v40, %v289_v40 }
 0x244   :  { %1619 = vmatmul.mubr.msk.bf16.gmra.mxu1 %vm169_vm4, %v292_v41 }
 0x245   :  { %1642 = vmatprep.mubr.msk.bf16.mxu1 %vm1841_vm1, %v1840_v1 }
 0x2f4   :  { %v344_v42 = vpop.f32.mrf.mxu1 }
 0x2f5   :  { %371 = vrot.lane.b32.xlu0 %v344_v42, %s1844_s10 }
 0x2f6   :  { %v1612_v43 = vpop.f32.mrf.mxu1 }
 0x2f7   :  { %v399_v43 = vmul.f32 %v1989_v27, %v1902_v8  ;;  %v1748_v27 = vld [vmem:[%s2234_s0 + $0x60] sm:$0xff]  }
 0x2f8   :  { %v347_v44 = vpop.f32.mrf.mxu1 }
 0x2f9   :  { %373 = vrot.lane.b32.xlu1 %v347_v44, %s1844_s10  ;;  %v400_v44 = vmul.f32 %v1993_v28, %v1909_v10  ;;  %v1749_v28 = vld [vmem:[%s2234_s0 + $0x58] sm:$0xff]  }
 0x2fa   :  { %v1613_v45 = vpop.f32.mrf.mxu1 }
 0x2fc   :  { %v352_v46 = vpop.f32.mrf.mxu1 }
 0x2fd   :  { %375 = vrot.lane.b32.xlu0 %v352_v46, %s1844_s10 }
 0x2fe   :  { %v1616_v47 = vpop.f32.mrf.mxu1 }
 0x300   :  { %v355_v49 = vpop.f32.mrf.mxu1 }
 0x301   :  { %377 = vrot.lane.b32.xlu1 %v355_v49, %s1844_s10 }
 0x302   :  { %v1617_v50 = vpop.f32.mrf.mxu1 }
 0x304   :  { %v360_v52 = vpop.f32.mrf.mxu1 }
 0x305   :  { %379 = vrot.lane.b32.xlu0 %v360_v52, %s1844_s10  ;;  %436 = vrot.lane.b32.xlu1 %v1887_v5, %s1843_s9  ;;  %v398_v5 = vmul.f32 %v1985_v26, %v1897_v7 }
 0x306   :  { %v1620_v53 = vpop.f32.mrf.mxu1 }
 0x307   :  { %v508_v53 = vld [vmem:[%s2234_s0 + $0x50] sm:$0xf] }
 0x308   :  { %v363_v54 = vpop.f32.mrf.mxu1 }
 0x309   :  { %438 = vrot.lane.b32.xlu0 %v1892_v6, %s1843_s9 }
 0x30a   :  { %v1621_v56 = vpop.f32.mrf.mxu1 }
 0x367   :  { %v372_v57 = vpop.permute.xlu0 %371 }
 0x368   :  { %v386_v58 = vadd.f32 %v372_v57, %v1962_v51  ;;  %v516_v57 = vsel %vm66_vm0, %v508_v53, 0 }
 0x36a   :  { %1776 = vtanh.f32 %v386_v58 }
 0x36b   :  { %v374_v60 = vpop.permute.xlu1 %373 }
 0x36c   :  { %v387_v61 = vadd.f32 %v374_v60, %v1965_v55  ;;  %v1750_v60 = vld [vmem:[%s2234_s0 + $0x88] sm:$0xff]  }
 0x36e   :  { %1778 = vtanh.f32 %v387_v61 }
 0x36f   :  { %v376_v62 = vpop.permute.xlu0 %375 }
 0x370   :  { %v388_v0 = vadd.f32 %v376_v62, %v1968_v59  ;;  %v461_v59 = vld [vmem:[%s2234_s0 + $0x48] sm:$0xf] }
 0x371   :  { %v466_v13 = vsel %vm66_vm0, %v461_v59, 0  ;;  %v1751_v59 = vld [vmem:[%s2234_s0 + $0x80] sm:$0xff]  }
 0x372   :  { %1780 = vtanh.f32 %v388_v0  ;;  %1623 = vmatpush3.bf16.msra.mxu0 %v466_v13  ;;  %v568_v13 = vld [vmem:[%s2234_s0 + $0x78] sm:$0x1] }
 0x373   :  { %v378_v2 = vpop.permute.xlu1 %377  ;;  %1628 = vmatprep.subr.bf16.mxu0 %v1840_v1 }
 0x374   :  { %v389_v3 = vadd.f32 %v378_v2, %v1971_v63 }
 0x376   :  { %1782 = vtanh.f32 %v389_v3 }
 0x377   :  { %v1777_v9 = vpop.eup %1776  ;;  %v380_v11 = vpop.permute.xlu0 %379 }
 0x378   :  { %v390_v12 = vadd.f32 %v380_v11, %v1974_v4  ;;  %411 = vrot.lane.b32.xlu1 %v1777_v9, %s1845_s11  ;;  %v437_v14 = vpop.permute.xlu1 %436 }
 0x37a   :  { %1784 = vtanh.f32 %v390_v12 }
 0x37b   :  { %v1779_v51 = vpop.eup %1778  ;;  %v439_v15 = vpop.permute.xlu0 %438 }
 0x37c   :  { %413 = vrot.lane.b32.xlu0 %v1779_v51, %s1845_s11 }
 0x37f   :  { %v1781_v55 = vpop.eup %1780 }
 0x380   :  { %415 = vrot.lane.b32.xlu1 %v1781_v55, %s1845_s11 }
 0x383   :  { %v1783_v63 = vpop.eup %1782 }
 0x384   :  { %417 = vrot.lane.b32.xlu0 %v1783_v63, %s1845_s11  ;;  %v2096_v63 = vld [vmem:[%s2234_s0 + $0x90] sm:$0xff]  }
 0x387   :  { %v1785_v4 = vpop.eup %1784 }
 0x388   :  { %440 = vrot.lane.b32.xlu0 %v1897_v7, %s1843_s9  ;;  %419 = vrot.lane.b32.xlu1 %v1785_v4, %s1845_s11  ;;  %v569_v4 = vunpack.c.l.bf16 %v568_v13 }
 0x38c   :  { %444 = vrot.lane.b32.xlu0 %v1909_v10, %s1843_s9  ;;  %442 = vrot.lane.b32.xlu1 %v1902_v8, %s1843_s9  ;;  %v1746_v8 = vld [vmem:[%s2234_s0 + $0x70] sm:$0xff]   ;;  %v1747_v10 = vld [vmem:[%s2234_s0 + $0x68] sm:$0xff]  }
 0x38d   :  { %1635 = vmatpush3.bf16.msra.mxu1 %v1746_v8 }
 0x38e   :  { %1636 = vmatprep.subr.bf16.mxu1 %v1840_v1 }
 0x391   :  { %1637 = vmatpush3.bf16.msra.mxu1 %v1747_v10 }
 0x392   :  { %1638 = vmatprep.subr.bf16.mxu1 %v1840_v1 }
 0x395   :  { %1639 = vmatpush3.bf16.msra.mxu1 %v1748_v27 }
 0x396   :  { %1640 = vmatprep.subr.bf16.mxu1 %v1840_v1 }
 0x399   :  { %1641 = vmatpush3.bf16.msra.mxu1 %v1749_v28 }
 0x39a   :  { %1660 = vmatprep.subr.bf16.mxu1 %v1840_v1 }
 0x3ea   :  { %v412_v17 = vpop.permute.xlu1 %411 }
 0x3eb   :  { %v426_v18 = vmul.f32 %v412_v17, %v401_v16 }
 0x3ed   :  { %v431_v23 = vadd.f32 %v426_v18, %v396_v19 }
 0x3ee   :  { %v414_v21 = vpop.permute.xlu0 %413 }
 0x3ef   :  { %v427_v29 = vmul.f32 %v414_v21, %v402_v20  ;;  %v451_v32 = vmul.f32 %v437_v14, %v431_v23  ;;  %v573_v14 = vrot.slane %v569_v4, %v1959_v48  ;;  %v1847_v21 = vmov 0   ;;  %v647_v23 = vld [vmem:[%s2234_s0 + $0x98] sm:$0x1] }
 0x3f1   :  { %v432_v30 = vadd.f32 %v427_v29, %v397_v24  ;;  %v648_v24 = vunpack.c.l.bf16 %v647_v23 }
 0x3f2   :  { %v416_v31 = vpop.permute.xlu1 %415 }
 0x3f3   :  { %v452_v33 = vmul.f32 %v439_v15, %v432_v30  ;;  %v428_v35 = vmul.f32 %v416_v31, %v403_v34  ;;  %v652_v31 = vrot.slane %v648_v24, %v1959_v48 }
 0x3f5   :  { %v456_v36 = vadd.f32 %v452_v33, %v451_v32  ;;  %v433_v40 = vadd.f32 %v428_v35, %v398_v5 }
 0x3f6   :  { %v418_v37 = vpop.permute.xlu0 %417 }
 0x3f7   :  { %v429_v22 = vmul.f32 %v418_v37, %v404_v38 }
 0x3f9   :  { %v434_v46 = vadd.f32 %v429_v22, %v399_v43  ;;  %v1848_v22 = vmov 1.0  }
 0x3fa   :  { %v420_v6 = vpop.permute.xlu1 %419  ;;  %v441_v25 = vpop.permute.xlu0 %440 }
 0x3fb   :  { %v430_v41 = vmul.f32 %v420_v6, %v405_v39  ;;  %v453_v42 = vmul.f32 %v441_v25, %v433_v40  ;;  %v711_v39 = vsel %vm665_vm6, 0.5, %v1848_v22  ;;  %v714_v40 = vsel %vm665_vm6, 0.5, %v1840_v1 }
 0x3fc   :  { %v2123_v6 = vsel %vm712_vm7, %v711_v39, 0.5  ;;  %v2125_v25 = vsel %vm712_vm7, %v714_v40, 0.5 }
 0x3fd   :  { %v457_v45 = vadd.f32 %v456_v36, %v453_v42  ;;  %v435_v47 = vadd.f32 %v430_v41, %v400_v44  ;;  %v839_v27 = vrot.slane %v2123_v6, 7  ;;  %v843_v28 = vrot.slane %v2125_v25, 7 }
 0x3fe   :  { %v443_v49 = vpop.permute.xlu1 %442  ;;  %v445_v50 = vpop.permute.xlu0 %444 }
 0x3ff   :  { %v454_v7 = vmul.f32 %v443_v49, %v434_v46  ;;  %v455_v52 = vmul.f32 %v445_v50, %v435_v47 }
 0x401   :  { %v458_v26 = vadd.f32 %v457_v45, %v454_v7 }
 0x403   :  { %v459_v54 = vadd.f32 %v458_v26, %v455_v52 }
 0x405   :  { %v460_v56 = vpack.c.bf16 %v459_v54, %v459_v54 }
 0x407   :  { %510 = vrot.lane.b32.xlu1 %v460_v56, %s1846_s16  ;;  %1625 = vmatmul.mubr.msk.bf16.vlgmr.msra.gmra.mxu0 %vm146_vm3, %v460_v56 }
 0x408   :  { %1629 = vmatpush3.bf16.msra.mxu0 %v516_v57  ;;  %1630 = vmatprep.mubr.msk.bf16.mxu0 %vm1841_vm1, %v1840_v1 }
 0x409   :  { %1646 = vmatprep.subr.bf16.mxu0 %v1840_v1 }
 0x479   :  { %v511_v58 = vpop.permute.xlu1 %510 }
 0x47a   :  { %1631 = vmatmul.mubr.msk.bf16.vlgmr.msra.gmra.mxu0 %vm146_vm3, %v511_v58 }
 0x47b   :  { %1650 = vmatprep.mubr.msk.bf16.mxu0 %vm1841_vm1, %v1840_v1  ;;  %1647 = vmatpush3.bf16.msra.mxu0 %v1750_v60 }
 0x47c   :  { %1648 = vmatprep.subr.bf16.mxu0 %v1840_v1 }
 0x47f   :  { %1649 = vmatpush3.bf16.msra.mxu0 %v1751_v59 }
 0x480   :  { %1654 = vmatprep.subr.bf16.mxu0 %v1840_v1 }
 0x4c7   :  { %v502_v61 = vpop.f32.mrf.mxu0 }
 0x4c9   :  { %v1626_v62 = vpop.f32.mrf.mxu0 }
 0x4cb   :  { %v505_v0 = vpop.f32.mrf.mxu0 }
 0x4cd   :  { %v1627_v2 = vpop.f32.mrf.mxu0 }
 0x53a   :  { %v552_v3 = vpop.f32.mrf.mxu0 }
 0x53b   :  { %v558_v9 = vmul.f32 %v552_v3, %v502_v61 }
 0x53c   :  { %v1632_v11 = vpop.f32.mrf.mxu0 }
 0x53d   :  { %v559_v12 = vpack.c.bf16 %v558_v9, %v558_v9 }
 0x53e   :  { %v555_v51 = vpop.f32.mrf.mxu0 }
 0x53f   :  { %1643 = vmatmul.mubr.msk.bf16.vlgmr.msra.gmra.mxu1 %vm598_vm5, %v559_v12 }
 0x540   :  { %v1633_v55 = vpop.f32.mrf.mxu0  ;;  %1662 = vmatprep.mubr.msk.bf16.mxu1 %vm1841_vm1, %v1840_v1  ;;  %1661 = vmatpush3.bf16.msra.mxu1 %v2096_v63 }
 0x541   :  { %1672 = vmatprep.subr.bf16.mxu1 %v1840_v1 }
 0x5ff   :  { %v636_v15 = vpop.f32.mrf.mxu1 }
 0x600   :  { %v637_v16 = vadd.f32 %v636_v15, %v573_v14 }
 0x601   :  { %v1644_v17 = vpop.f32.mrf.mxu1 }
 0x602   :  { %v642_v18 = vpack.c.bf16 %v637_v16, %v637_v16 }
 0x603   :  { %v639_v19 = vpop.f32.mrf.mxu1 }
 0x604   :  { %1651 = vmatmul.mubr.msk.bf16.vlgmr.msra.gmra.mxu0 %vm665_vm6, %v642_v18 }
 0x605   :  { %1655 = vmatpush3.bf16.msra.mxu0 %v2096_v63  ;;  %v1645_v20 = vpop.f32.mrf.mxu1  ;;  %1656 = vmatprep.mubr.msk.bf16.mxu0 %vm1841_vm1, %v1840_v1 }
 0x606   :  { %1666 = vmatprep.subr.bf16.mxu0 %v1840_v1  ;;  %v920_v20 = vrot.slane %v2123_v6, 6 }
 0x60c   :  { %1657 = vmatmul.mubr.bf16.vlgmr.msra.gmra.mxu0 %v1847_v21  ;;  %v923_v21 = vrot.slane %v2125_v25, 6 }
 0x60d   :  { %1667 = vmatpush3.bf16.msra.mxu0 %v2096_v63  ;;  %1668 = vmatprep.mubr.msk.bf16.mxu0 %vm1841_vm1, %v1840_v1 }
 0x60e   :  { %1678 = vmatprep.subr.bf16.mxu0 %v1840_v1 }
 0x6c4   :  { %v703_v29 = vpop.f32.mrf.mxu0 }
 0x6c5   :  { %v2117_v34 = vadd.f32 %v703_v29, %v652_v31 }
 0x6c6   :  { %v1652_v30 = vpop.f32.mrf.mxu0 }
 0x6c8   :  { %v706_v32 = vpop.f32.mrf.mxu0 }
 0x6ca   :  { %v1653_v33 = vpop.f32.mrf.mxu0 }
 0x6cc   :  { %v759_v35 = vpop.f32.mrf.mxu0 }
 0x6cd   :  { %v765_v36 = vadd.f32 %v759_v35, %v2117_v34 }
 0x6ce   :  { %v1658_v37 = vpop.f32.mrf.mxu0 }
 0x6cf   :  { %1786 = vtanh.f32 %v765_v36 }
 0x6d0   :  { %v762_v38 = vpop.f32.mrf.mxu0 }
 0x6d2   :  { %v1659_v5 = vpop.f32.mrf.mxu0 }
 0x6dc   :  { %v1787_v48 = vpop.eup %1786 }
 0x6dd   :  { %v767_v41 = vmul.f32 %v1787_v48, %v2123_v6 }
 0x6df   :  { %v768_v42 = vadd.f32 %v767_v41, %v2125_v25 }
 0x6e1   :  { %771 = vrot.lane.b32.xlu0 %v768_v42, %s1845_s11  ;;  %v769_v45 = vmul.f32 0.0, %v768_v42 }
 0x753   :  { %v772_v43 = vpop.permute.xlu0 %771 }
 0x754   :  { %v774_v44 = vmul.f32 %v772_v43, %v768_v42 }
 0x756   :  { %776 = vrot.lane.b32.xlu1 %v774_v44, %s1849_s6 }
 0x7c8   :  { %v777_v46 = vpop.permute.xlu1 %776 }
 0x7c9   :  { %v779_v47 = vadd.f32 %v777_v46, %v769_v45  ;;  %v999_v46 = vrot.slane %v2123_v6, 5 }
 0x7cb   :  { %1788 = vtanh.f32 %v779_v47  ;;  %v847_v2 = vrot.slane %v779_v47, 7  ;;  %v1002_v47 = vrot.slane %v2125_v25, 5 }
 0x7d8   :  { %v1789_v49 = vpop.eup %1788 }
 0x7d9   :  { %782 = vrot.lane.b32.xlu0 %v1789_v49, %s1844_s10 }
 0x84b   :  { %v783_v50 = vpop.permute.xlu0 %782 }
 0x84c   :  { %v785_v7 = vmul.f32 %v783_v50, %v768_v42 }
 0x84e   :  { %v786_v26 = vpack.c.bf16 %v785_v7, %v785_v7 }
 0x850   :  { %788 = vrot.lane.b32.xlu1 %v786_v26, %s1850_s7 }
 0x8c2   :  { %v789_v52 = vpop.permute.xlu1 %788 }
 0x8c3   :  { %1663 = vmatmul.mubr.msk.bf16.vlgmr.msra.gmra.mxu1 %vm169_vm4, %v789_v52 }
 0x8c4   :  { %1673 = vmatpush3.bf16.msra.mxu1 %v2096_v63  ;;  %1674 = vmatprep.mubr.msk.bf16.mxu1 %vm1841_vm1, %v1840_v1 }
 0x8c5   :  { %1684 = vmatprep.subr.bf16.mxu1 %v1840_v1 }
 0x983   :  { %v827_v53 = vpop.f32.mrf.mxu1 }
 0x984   :  { %v834_v54 = vrot.slane %v827_v53, 7 }
 0x985   :  { %v1664_v56 = vpop.f32.mrf.mxu1 }
 0x986   :  { %v836_v57 = vadd.f32 %v834_v54, %v2117_v34 }
 0x987   :  { %v830_v8 = vpop.f32.mrf.mxu1 }
 0x988   :  { %1790 = vtanh.f32 %v836_v57 }
 0x989   :  { %v1665_v10 = vpop.f32.mrf.mxu1 }
 0x995   :  { %v1791_v58 = vpop.eup %1790 }
 0x996   :  { %v841_v60 = vmul.f32 %v1791_v58, %v839_v27 }
 0x998   :  { %v845_v61 = vadd.f32 %v843_v28, %v841_v60 }
 0x99a   :  { %851 = vrot.lane.b32.xlu0 %v845_v61, %s1845_s11  ;;  %v849_v3 = vmul.f32 %v847_v2, %v845_v61 }
 0xa0c   :  { %v852_v62 = vpop.permute.xlu0 %851 }
 0xa0d   :  { %v854_v0 = vmul.f32 %v852_v62, %v845_v61 }
 0xa0f   :  { %856 = vrot.lane.b32.xlu1 %v854_v0, %s1849_s6 }
 0xa81   :  { %v857_v9 = vpop.permute.xlu1 %856 }
 0xa82   :  { %v859_v11 = vadd.f32 %v857_v9, %v849_v3 }
 0xa84   :  { %1792 = vtanh.f32 %v859_v11  ;;  %v927_v32 = vrot.slane %v859_v11, 7 }
 0xa91   :  { %v1793_v12 = vpop.eup %1792 }
 0xa92   :  { %862 = vrot.lane.b32.xlu0 %v1793_v12, %s1844_s10  ;;  %v1080_v12 = vrot.slane %v2123_v6, 4 }
 0xb04   :  { %v863_v51 = vpop.permute.xlu0 %862 }
 0xb05   :  { %v865_v55 = vmul.f32 %v863_v51, %v845_v61  ;;  %v1083_v51 = vrot.slane %v2125_v25, 4 }
 0xb07   :  { %v866_v59 = vpack.c.bf16 %v865_v55, %v865_v55 }
 0xb09   :  { %v868_v13 = vshrl.u32 %v866_v59, 16 }
 0xb0b   :  { %870 = vrot.lane.b32.xlu1 %v868_v13, %s1850_s7 }
 0xb7d   :  { %v871_v4 = vpop.permute.xlu1 %870 }
 0xb7e   :  { %1669 = vmatmul.mubr.msk.bf16.vlgmr.msra.gmra.mxu0 %vm169_vm4, %v871_v4 }
 0xb7f   :  { %1679 = vmatpush3.bf16.msra.mxu0 %v2096_v63  ;;  %1680 = vmatprep.mubr.msk.bf16.mxu0 %vm1841_vm1, %v1840_v1 }
 0xb80   :  { %1690 = vmatprep.subr.bf16.mxu0 %v1840_v1 }
 0xc3e   :  { %v909_v14 = vpop.f32.mrf.mxu0 }
 0xc3f   :  { %v916_v15 = vrot.slane %v909_v14, 6 }
 0xc40   :  { %v1670_v16 = vpop.f32.mrf.mxu0 }
 0xc41   :  { %v918_v17 = vadd.f32 %v916_v15, %v2117_v34 }
 0xc42   :  { %v912_v18 = vpop.f32.mrf.mxu0 }
 0xc43   :  { %1794 = vtanh.f32 %v918_v17 }
 0xc44   :  { %v1671_v19 = vpop.f32.mrf.mxu0 }
 0xc50   :  { %v1795_v23 = vpop.eup %1794 }
 0xc51   :  { %v922_v24 = vmul.f32 %v1795_v23, %v920_v20 }
 0xc53   :  { %v925_v29 = vadd.f32 %v923_v21, %v922_v24 }
 0xc55   :  { %931 = vrot.lane.b32.xlu0 %v925_v29, %s1845_s11  ;;  %v929_v33 = vmul.f32 %v927_v32, %v925_v29 }
 0xcc7   :  { %v932_v30 = vpop.permute.xlu0 %931 }
 0xcc8   :  { %v934_v31 = vmul.f32 %v932_v30, %v925_v29 }
 0xcca   :  { %936 = vrot.lane.b32.xlu1 %v934_v31, %s1849_s6 }
 0xd3c   :  { %v937_v35 = vpop.permute.xlu1 %936 }
 0xd3d   :  { %v939_v36 = vadd.f32 %v937_v35, %v929_v33 }
 0xd3f   :  { %1796 = vtanh.f32 %v939_v36  ;;  %v1006_v53 = vrot.slane %v939_v36, 7 }
 0xd4c   :  { %v1797_v37 = vpop.eup %1796 }
 0xd4d   :  { %942 = vrot.lane.b32.xlu0 %v1797_v37, %s1844_s10  ;;  %v1159_v37 = vrot.slane %v2123_v6, 3 }
 0xdbf   :  { %v943_v38 = vpop.permute.xlu0 %942 }
 0xdc0   :  { %v945_v5 = vmul.f32 %v943_v38, %v925_v29  ;;  %v1162_v38 = vrot.slane %v2125_v25, 3 }
 0xdc2   :  { %v946_v22 = vpack.c.bf16 %v945_v5, %v945_v5 }
 0xdc4   :  { %v948_v39 = vrot.slane %v946_v22, 1 }
 0xdc6   :  { %949 = vrot.lane.b32.xlu1 %v948_v39, %s1850_s7 }
 0xe38   :  { %v950_v40 = vpop.permute.xlu1 %949 }
 0xe39   :  { %1675 = vmatmul.mubr.msk.bf16.vlgmr.msra.gmra.mxu1 %vm169_vm4, %v950_v40 }
 0xe3a   :  { %1685 = vmatpush3.bf16.msra.mxu1 %v2096_v63  ;;  %1686 = vmatprep.mubr.msk.bf16.mxu1 %vm1841_vm1, %v1840_v1 }
 0xe3b   :  { %1696 = vmatprep.subr.bf16.mxu1 %v1840_v1 }
 0xef9   :  { %v988_v48 = vpop.f32.mrf.mxu1 }
 0xefa   :  { %v995_v41 = vrot.slane %v988_v48, 5 }
 0xefb   :  { %v1676_v42 = vpop.f32.mrf.mxu1 }
 0xefc   :  { %v997_v43 = vadd.f32 %v995_v41, %v2117_v34 }
 0xefd   :  { %v991_v44 = vpop.f32.mrf.mxu1 }
 0xefe   :  { %1798 = vtanh.f32 %v997_v43 }
 0xeff   :  { %v1677_v45 = vpop.f32.mrf.mxu1 }
 0xf0b   :  { %v1799_v49 = vpop.eup %1798 }
 0xf0c   :  { %v1001_v50 = vmul.f32 %v1799_v49, %v999_v46 }
 0xf0e   :  { %v1004_v7 = vadd.f32 %v1002_v47, %v1001_v50 }
 0xf10   :  { %1010 = vrot.lane.b32.xlu0 %v1004_v7, %s1845_s11  ;;  %v1008_v54 = vmul.f32 %v1006_v53, %v1004_v7 }
 0xf82   :  { %v1011_v26 = vpop.permute.xlu0 %1010 }
 0xf83   :  { %v1013_v52 = vmul.f32 %v1011_v26, %v1004_v7 }
 0xf85   :  { %1015 = vrot.lane.b32.xlu1 %v1013_v52, %s1849_s6 }
 0xff7   :  { %v1016_v56 = vpop.permute.xlu1 %1015 }
 0xff8   :  { %v1018_v57 = vadd.f32 %v1016_v56, %v1008_v54 }
 0xffa   :  { %1800 = vtanh.f32 %v1018_v57  ;;  %v1087_v15 = vrot.slane %v1018_v57, 7 }
0x1007   :  { %v1801_v8 = vpop.eup %1800 }
0x1008   :  { %1021 = vrot.lane.b32.xlu0 %v1801_v8, %s1844_s10  ;;  %v1240_v8 = vrot.slane %v2123_v6, 2 }
0x107a   :  { %v1022_v10 = vpop.permute.xlu0 %1021 }
0x107b   :  { %v1024_v27 = vmul.f32 %v1022_v10, %v1004_v7  ;;  %v1243_v10 = vrot.slane %v2125_v25, 2 }
0x107d   :  { %v1025_v28 = vpack.c.bf16 %v1024_v27, %v1024_v27 }
0x107f   :  { %v1027_v58 = vshrl.u32 %v1025_v28, 16 }
0x1081   :  { %v1029_v60 = vrot.slane %v1027_v58, 1 }
0x1083   :  { %1030 = vrot.lane.b32.xlu1 %v1029_v60, %s1850_s7 }
0x10f5   :  { %v1031_v61 = vpop.permute.xlu1 %1030 }
0x10f6   :  { %1681 = vmatmul.mubr.msk.bf16.vlgmr.msra.gmra.mxu0 %vm169_vm4, %v1031_v61 }
0x10f7   :  { %1691 = vmatpush3.bf16.msra.mxu0 %v2096_v63  ;;  %1692 = vmatprep.mubr.msk.bf16.mxu0 %vm1841_vm1, %v1840_v1 }
0x10f8   :  { %1702 = vmatprep.subr.bf16.mxu0 %v1840_v1 }
0x11b6   :  { %v1069_v62 = vpop.f32.mrf.mxu0 }
0x11b7   :  { %v1076_v0 = vrot.slane %v1069_v62, 4 }
0x11b8   :  { %v1682_v2 = vpop.f32.mrf.mxu0 }
0x11b9   :  { %v1078_v3 = vadd.f32 %v1076_v0, %v2117_v34 }
0x11ba   :  { %v1072_v9 = vpop.f32.mrf.mxu0 }
0x11bb   :  { %1802 = vtanh.f32 %v1078_v3 }
0x11bc   :  { %v1683_v11 = vpop.f32.mrf.mxu0 }
0x11c8   :  { %v1803_v55 = vpop.eup %1802 }
0x11c9   :  { %v1082_v59 = vmul.f32 %v1803_v55, %v1080_v12 }
0x11cb   :  { %v1085_v13 = vadd.f32 %v1083_v51, %v1082_v59 }
0x11cd   :  { %1091 = vrot.lane.b32.xlu0 %v1085_v13, %s1845_s11  ;;  %v1089_v16 = vmul.f32 %v1087_v15, %v1085_v13 }
0x123f   :  { %v1092_v4 = vpop.permute.xlu0 %1091 }
0x1240   :  { %v1094_v14 = vmul.f32 %v1092_v4, %v1085_v13 }
0x1242   :  { %1096 = vrot.lane.b32.xlu1 %v1094_v14, %s1849_s6 }
0x12b4   :  { %v1097_v17 = vpop.permute.xlu1 %1096 }
0x12b5   :  { %v1099_v18 = vadd.f32 %v1097_v17, %v1089_v16 }
0x12b7   :  { %1804 = vtanh.f32 %v1099_v18  ;;  %v1166_v48 = vrot.slane %v1099_v18, 7  ;;  %v1319_v18 = vrot.slane %v2123_v6, 1  ;;  %v1753_v6 = vld [vmem:[%s2234_s0 + $0xa0] sm:$0xff]  }
0x12c4   :  { %v1805_v19 = vpop.eup %1804 }
0x12c5   :  { %1102 = vrot.lane.b32.xlu0 %v1805_v19, %s1844_s10  ;;  %v1322_v19 = vrot.slane %v2125_v25, 1 }
0x1337   :  { %v1103_v20 = vpop.permute.xlu0 %1102 }
0x1338   :  { %v1105_v21 = vmul.f32 %v1103_v20, %v1085_v13 }
0x133a   :  { %v1106_v23 = vpack.c.bf16 %v1105_v21, %v1105_v21 }
0x133c   :  { %v1108_v24 = vrot.slane %v1106_v23, 2 }
0x133e   :  { %1109 = vrot.lane.b32.xlu1 %v1108_v24, %s1850_s7 }
0x13b0   :  { %v1110_v29 = vpop.permute.xlu1 %1109 }
0x13b1   :  { %1687 = vmatmul.mubr.msk.bf16.vlgmr.msra.gmra.mxu1 %vm169_vm4, %v1110_v29 }
0x13b2   :  { %1697 = vmatpush3.bf16.msra.mxu1 %v2096_v63  ;;  %1698 = vmatprep.mubr.msk.bf16.mxu1 %vm1841_vm1, %v1840_v1 }
0x13b3   :  { %1708 = vmatprep.subr.bf16.mxu1 %v1840_v1 }
0x1471   :  { %v1148_v30 = vpop.f32.mrf.mxu1 }
0x1472   :  { %v1155_v31 = vrot.slane %v1148_v30, 3 }
0x1473   :  { %v1688_v32 = vpop.f32.mrf.mxu1 }
0x1474   :  { %v1157_v33 = vadd.f32 %v1155_v31, %v2117_v34 }
0x1475   :  { %v1151_v35 = vpop.f32.mrf.mxu1 }
0x1476   :  { %1806 = vtanh.f32 %v1157_v33  ;;  %v1754_v33 = vld [vmem:[%s2234_s0 + $0xb8] sm:$0xff]  }
0x1477   :  { %v1689_v36 = vpop.f32.mrf.mxu1 }
0x1483   :  { %v1807_v5 = vpop.eup %1806 }
0x1484   :  { %v1161_v22 = vmul.f32 %v1807_v5, %v1159_v37 }
0x1486   :  { %v1164_v63 = vadd.f32 %v1162_v38, %v1161_v22 }
0x1488   :  { %1170 = vrot.lane.b32.xlu0 %v1164_v63, %s1845_s11  ;;  %v1168_v41 = vmul.f32 %v1166_v48, %v1164_v63 }
0x14fa   :  { %v1171_v39 = vpop.permute.xlu0 %1170 }
0x14fb   :  { %v1173_v40 = vmul.f32 %v1171_v39, %v1164_v63  ;;  %v1348_v39 = vld [vmem:[%s2234_s0 + $0xa8] sm:$0x1] }
0x14fd   :  { %1175 = vrot.lane.b32.xlu1 %v1173_v40, %s1849_s6 }
0x156f   :  { %v1176_v42 = vpop.permute.xlu1 %1175 }
0x1570   :  { %v1178_v43 = vadd.f32 %v1176_v42, %v1168_v41 }
0x1572   :  { %1808 = vtanh.f32 %v1178_v43  ;;  %v1247_v62 = vrot.slane %v1178_v43, 7 }
0x157f   :  { %v1809_v44 = vpop.eup %1808 }
0x1580   :  { %1181 = vrot.lane.b32.xlu0 %v1809_v44, %s1844_s10 }
0x15f2   :  { %v1182_v45 = vpop.permute.xlu0 %1181 }
0x15f3   :  { %v1184_v46 = vmul.f32 %v1182_v45, %v1164_v63  ;;  %v1755_v63 = vld [vmem:[%s2234_s0 + $0xb0] sm:$0xff]  }
0x15f5   :  { %v1185_v47 = vpack.c.bf16 %v1184_v46, %v1184_v46  ;;  %v1411_v46 = vld [vmem:[%s2234_s0 + $0xc0] sm:$0x1] }
0x15f7   :  { %v1187_v49 = vshrl.u32 %v1185_v47, 16  ;;  %v1412_v47 = vunpack.c.l.bf16 %v1411_v46 }
0x15f9   :  { %v1189_v50 = vrot.slane %v1187_v49, 2 }
0x15fb   :  { %1190 = vrot.lane.b32.xlu1 %v1189_v50, %s1850_s7 }
0x166d   :  { %v1191_v7 = vpop.permute.xlu1 %1190 }
0x166e   :  { %1693 = vmatmul.mubr.msk.bf16.vlgmr.msra.gmra.mxu0 %vm169_vm4, %v1191_v7 }
0x166f   :  { %1704 = vmatprep.mubr.msk.bf16.mxu0 %vm1841_vm1, %v1840_v1  ;;  %1703 = vmatpush3.bf16.msra.mxu0 %v1753_v6 }
0x172e   :  { %v1229_v26 = vpop.f32.mrf.mxu0 }
0x172f   :  { %v1236_v52 = vrot.slane %v1229_v26, 2 }
0x1730   :  { %v1694_v53 = vpop.f32.mrf.mxu0 }
0x1731   :  { %v1238_v54 = vadd.f32 %v1236_v52, %v2117_v34 }
0x1732   :  { %v1232_v56 = vpop.f32.mrf.mxu0 }
0x1733   :  { %1810 = vtanh.f32 %v1238_v54 }
0x1734   :  { %v1695_v57 = vpop.f32.mrf.mxu0 }
0x1740   :  { %v1811_v27 = vpop.eup %1810 }
0x1741   :  { %v1242_v28 = vmul.f32 %v1811_v27, %v1240_v8 }
0x1743   :  { %v1245_v58 = vadd.f32 %v1243_v10, %v1242_v28 }
0x1745   :  { %1251 = vrot.lane.b32.xlu0 %v1245_v58, %s1845_s11  ;;  %v1249_v0 = vmul.f32 %v1247_v62, %v1245_v58 }
0x17b7   :  { %v1252_v60 = vpop.permute.xlu0 %1251 }
0x17b8   :  { %v1254_v61 = vmul.f32 %v1252_v60, %v1245_v58 }
0x17ba   :  { %1256 = vrot.lane.b32.xlu1 %v1254_v61, %s1849_s6 }
0x182c   :  { %v1257_v2 = vpop.permute.xlu1 %1256 }
0x182d   :  { %v1259_v3 = vadd.f32 %v1257_v2, %v1249_v0 }
0x182f   :  { %1812 = vtanh.f32 %v1259_v3  ;;  %v1326_v30 = vrot.slane %v1259_v3, 7 }
0x183c   :  { %v1813_v9 = vpop.eup %1812 }
0x183d   :  { %1262 = vrot.lane.b32.xlu0 %v1813_v9, %s1844_s10 }
0x18af   :  { %v1263_v11 = vpop.permute.xlu0 %1262 }
0x18b0   :  { %v1265_v12 = vmul.f32 %v1263_v11, %v1245_v58 }
0x18b2   :  { %v1266_v51 = vpack.c.bf16 %v1265_v12, %v1265_v12 }
0x18b4   :  { %v1268_v55 = vrot.slane %v1266_v51, 3 }
0x18b6   :  { %1269 = vrot.lane.b32.xlu1 %v1268_v55, %s1850_s7 }
0x1928   :  { %v1270_v59 = vpop.permute.xlu1 %1269 }
0x1929   :  { %1699 = vmatmul.mubr.msk.bf16.vlgmr.msra.gmra.mxu1 %vm169_vm4, %v1270_v59 }
0x192a   :  { %1712 = vmatprep.mubr.msk.bf16.mxu1 %vm1841_vm1, %v1840_v1  ;;  %1709 = vmatpush3.bf16.msra.mxu1 %v1754_v33 }
0x192b   :  { %1710 = vmatprep.subr.bf16.mxu1 %v1840_v1  ;;  %v1349_v1 = vunpack.c.l.bf16 %v1348_v39 }
0x192e   :  { %1711 = vmatpush3.bf16.msra.mxu1 %v1755_v63 }
0x19e9   :  { %v1308_v13 = vpop.f32.mrf.mxu1 }
0x19ea   :  { %v1315_v4 = vrot.slane %v1308_v13, 1 }
0x19eb   :  { %v1700_v14 = vpop.f32.mrf.mxu1 }
0x19ec   :  { %v1317_v15 = vadd.f32 %v1315_v4, %v2117_v34 }
0x19ed   :  { %v1311_v16 = vpop.f32.mrf.mxu1 }
0x19ee   :  { %1814 = vtanh.f32 %v1317_v15 }
0x19ef   :  { %v1701_v17 = vpop.f32.mrf.mxu1 }
0x19fb   :  { %v1815_v20 = vpop.eup %1814 }
0x19fc   :  { %v1321_v21 = vmul.f32 %v1815_v20, %v1319_v18 }
0x19fe   :  { %v1324_v23 = vadd.f32 %v1322_v19, %v1321_v21 }
0x1a00   :  { %1330 = vrot.lane.b32.xlu0 %v1324_v23, %s1845_s11  ;;  %v1328_v31 = vmul.f32 %v1326_v30, %v1324_v23 }
0x1a72   :  { %v1331_v24 = vpop.permute.xlu0 %1330 }
0x1a73   :  { %v1333_v29 = vmul.f32 %v1331_v24, %v1324_v23 }
0x1a75   :  { %1335 = vrot.lane.b32.xlu1 %v1333_v29, %s1849_s6 }
0x1ae7   :  { %v1336_v32 = vpop.permute.xlu1 %1335 }
0x1ae8   :  { %v1338_v34 = vadd.f32 %v1336_v32, %v1328_v31 }
0x1aea   :  { %1816 = vtanh.f32 %v1338_v34 }
0x1af7   :  { %v1817_v25 = vpop.eup %1816 }
0x1af8   :  { %1341 = vrot.lane.b32.xlu0 %v1817_v25, %s1844_s10 }
0x1b6a   :  { %v1342_v35 = vpop.permute.xlu0 %1341 }
0x1b6b   :  { %v1344_v36 = vmul.f32 %v1342_v35, %v1324_v23 }
0x1b6d   :  { %v1345_v37 = vpack.c.bf16 %v1344_v36, %v1344_v36 }
0x1b6f   :  { %v1351_v38 = vshrl.u32 %v1345_v37, 16 }
0x1b71   :  { %v1353_v5 = vrot.slane %v1351_v38, 3 }
0x1b73   :  { %1354 = vrot.lane.b32.xlu1 %v1353_v5, %s1850_s7 }
0x1be5   :  { %v1355_v22 = vpop.permute.xlu1 %1354 }
0x1be6   :  { %1705 = vmatmul.mubr.msk.bf16.vlgmr.msra.gmra.mxu0 %vm169_vm4, %v1355_v22 }
0x1ca6   :  { %v1399_v40 = vpop.f32.mrf.mxu0 }
0x1ca7   :  { %v1400_v48 = vadd.f32 %v1399_v40, %v1349_v1 }
0x1ca8   :  { %v1706_v41 = vpop.f32.mrf.mxu0 }
0x1ca9   :  { %v1405_v42 = vmax.f32 %v1400_v48, 0.0 }
0x1caa   :  { %v1402_v43 = vpop.f32.mrf.mxu0 }
0x1cab   :  { %v1406_v44 = vpack.c.bf16 %v1405_v42, %v1405_v42 }
0x1cac   :  { %v1707_v45 = vpop.f32.mrf.mxu0 }
0x1cad   :  { %1713 = vmatmul.mubr.msk.bf16.vlgmr.msra.gmra.mxu1 %vm665_vm6, %v1406_v44 }
0x1d6d   :  { %v1462_v49 = vpop.f32.mrf.mxu1 }
0x1d6e   :  { %v1463_v50 = vadd.f32 %v1462_v49, %v1412_v47 }
0x1d6f   :  { %v1714_v7 = vpop.f32.mrf.mxu1 }
0x1d70   :  { %1469 = vst.msk [vmem:[#allocation2] sm:$0x1] %vm1468_vm8, %v1463_v50 }
0x1d71   :  { %v1465_v26 = vpop.f32.mrf.mxu1 }
0x1d72   :  { %1829 = shalt.err (!%p1826_p4)
}
0x1d73   :  { %1479 = dma.vmem_to_hbm [thread:$0]  %s1477_s19, 16, %s2236_s2, [#allocation3]   ;;  %v1715_v52 = vpop.f32.mrf.mxu1 }
0x1d74   :  { %1838 = dma.done.wait [#allocation3], 16  }
0x1d75   :  { %1839 = vsyncadd [#allocation3], 4294967280 }
0x1d76   :  { %1483 = vsyncpa [#allocation3], 1 }

</bundles_post_ra>
